<compile_context>
chip_gen: v5e
topology: v5e:2x2
jax: 0.10.0
libtpu: 0.0.40
codegen_flags: <defaults>
</compile_context>

<pallas_src>
import functools

import jax
import jax.numpy as jnp
from jax.experimental import pallas as pl
from jax.experimental.pallas import tpu as pltpu


def _cpe_kernel(dis_ref, x_ref, p_ref, o_ref, *, kernel_size, width, t, c, nb):
    """Processes nb batch elements per grid step.

    dis_ref : (1, 2, nb*ks*tw)  transposed distance features (2 sublanes, lane-dense)
    x_ref   : (nb, c, tw)       NC(T*W) input, one (c, tw) slab per batch element
    p_ref   : (128 + 2c, 128)   packed parameter slab (see pack_params)
    o_ref   : (nb, c, tw)       output, NC(T*W) (lane-dense stores)
    """
    ks = kernel_size
    pad = (ks - 1) // 2
    tw = t * width
    bf16 = jnp.bfloat16

    # ---- unpack the single parameter slab (static sublane / lane slices) ----
    w2e = p_ref[0:128, :]                            # (128,128): cols 0:64 = W2^T, rest meet zeros
    w1c0 = p_ref[0:128, 64:65]                       # (128,1)  W1[0,:] (rows 64: are 0)
    w1c1 = p_ref[0:128, 65:66]                       # (128,1)  W1[1,:]
    b1c = p_ref[0:128, 66:67]                        # (128,1)  b1
    b2c = p_ref[0:128, 67:68]                        # (128,1)  b2
    w3e = p_ref[128:128 + c, :]                      # (c,128)  group->channel expanded W3^T
    wvt = p_ref[128 + c:128 + 2 * c, 0:c]            # (c,c)    Wv^T
    bvc = p_ref[128 + c:128 + 2 * c, c:c + 1]        # (c,1)    bv
    b3c = p_ref[128 + c:128 + 2 * c, c + 1:c + 2]    # (c,1)    expanded b3

    # Hoisted once per grid step (not per batch element / per tap).
    w2e_bf = w2e.astype(bf16)
    w3e_bf = w3e.astype(bf16)
    wvt_bf = wvt.astype(bf16)
    halo = jnp.broadcast_to(bvc, (c, pad * width)) if pad > 0 else None

    # ---- fused, transposed 3-layer MLP over every (batch, tap, position) column ----
    d = dis_ref[0]                                                   # (2, L), L = nb*ks*tw
    d0 = d[0:1, :]
    d1 = d[1:2, :]
    # 2->64 layer on the VPU (K=2 would waste the MXU); zero-extended to 128 rows.
    h1 = jnp.maximum(w1c0 * d0 + w1c1 * d1 + b1c, 0.0)               # (128, L), rows 64: are 0
    h2 = jnp.dot(w2e_bf, h1.astype(bf16),
                 preferred_element_type=jnp.float32) + b2c           # (128, L)
    h2 = jnp.maximum(h2, 0.0)
    logits = jnp.dot(w3e_bf, h2.astype(bf16),
                     preferred_element_type=jnp.float32) + b3c       # (c, L), per-channel

    # ---- v projection: ONE matmul over all nb*tw positions ----
    if nb > 1:
        x_all = jnp.concatenate([x_ref[bi] for bi in range(nb)], axis=1)   # (c, nb*tw)
    else:
        x_all = x_ref[0]
    v_all = jnp.dot(wvt_bf, x_all.astype(bf16),
                    preferred_element_type=jnp.float32) + bvc        # (c, nb*tw)

    for bi in range(nb):
        base = bi * ks * tw
        # per-tap logit slices are lane-tile aligned when tw % 128 == 0
        lg = [logits[:, base + j * tw: base + (j + 1) * tw] for j in range(ks)]
        m = lg[0]
        for j in range(1, ks):
            m = jnp.maximum(m, lg[j])
        ex = [jnp.exp(l - m) for l in lg]                            # EUP
        s = ex[0]
        for j in range(1, ks):
            s = s + ex[j]
        inv = pl.reciprocal(s, approx=True)                          # EUP, free slot

        v = v_all[:, bi * tw:(bi + 1) * tw]                          # (c, tw), this batch
        # zero-padded x rows become plain bv after the biased Linear, so the halo the
        # boundary taps need is just bv columns (no padded x copy through HBM).
        if pad > 0:
            v_pad = jnp.concatenate([halo, v, halo], axis=1)         # (c, tw + 2*pad*w)
        else:
            v_pad = v

        acc = jnp.zeros((c, tw), jnp.float32)
        for j in range(ks):
            vj = v_pad[:, j * width: j * width + tw]                 # (c, tw) window at tap j
            acc = acc + (ex[j] * inv) * vj
        o_ref[bi, :, :] = acc.astype(o_ref.dtype)


def init_params(key, channels, groups):
    c = channels
    keys = jax.random.split(key, 8)
    scale = 0.1
    w1 = scale * jax.random.normal(keys[0], (2, 64), jnp.float32)
    b1 = scale * jax.random.normal(keys[1], (1, 64), jnp.float32)
    w2 = scale * jax.random.normal(keys[2], (64, 128), jnp.float32)
    b2 = scale * jax.random.normal(keys[3], (1, 128), jnp.float32)
    w3 = scale * jax.random.normal(keys[4], (128, groups), jnp.float32)
    b3 = scale * jax.random.normal(keys[5], (1, groups), jnp.float32)
    # kv_func = Linear(c, 2c).  Only the v-half (output channels c:2c) reaches the output.
    w_kv = scale * jax.random.normal(keys[6], (2 * c, c), jnp.float32)
    b_kv = scale * jax.random.normal(keys[7], (1, 2 * c), jnp.float32)
    wv = w_kv[c:, :].T            # (c, c) so that v = patch @ wv + bv
    bv = b_kv[:, c:]              # (1, c)
    return (w1, b1, w2, b2, w3, b3, wv, bv)


def pack_params(params, c, groups):
    """Pack all 8 small parameter tensors into one lane-dense (128+2c, 128) f32 slab."""
    (w1, b1, w2, b2, w3, b3, wv, bv) = params
    hd = c // groups
    assert c + 2 <= 128
    p = jnp.zeros((128 + 2 * c, 128), jnp.float32)
    # Layer-2 weight (transposed) + (stashed in its otherwise-zero columns) the layer-1
    # weight/bias columns and b2; the stash columns only ever multiply zero rows of h1.
    p = p.at[0:128, 0:64].set(w2.T)
    p = p.at[0:64, 64].set(w1[0])
    p = p.at[0:64, 65].set(w1[1])
    p = p.at[0:64, 66].set(b1[0])
    p = p.at[0:128, 67].set(b2[0])
    # Layer-3 weight/bias expanded group->channel (channel k uses group k // hd,
    # repeated consecutively -> replaces the old `e` matmul and in-kernel repeats).
    p = p.at[128:128 + c, :].set(jnp.repeat(w3.T, hd, axis=0))
    p = p.at[128 + c:128 + 2 * c, 0:c].set(wv.T)
    p = p.at[128 + c:128 + 2 * c, c].set(bv[0])
    p = p.at[128 + c:128 + 2 * c, c + 1].set(jnp.repeat(b3[0], hd))
    return p


def _is_dual_tensorcore_chip():
    # v7x has 2 TensorCores per chip; v5e / v6e have 1.
    try:
        kind = jax.devices()[0].device_kind.lower()
    except Exception:
        return False
    return "7" in kind


def cpe_forward(x, dis, params, *, kernel_size, groups, batch_block=None):
    b, c, t, w = x.shape
    ks = kernel_size
    assert ks % 2 == 1, "stride-1 / odd kernel_size assumed (as in the PyTorch module)"
    assert c % groups == 0
    tw = t * w

    # Batch elements per grid step: fold everything on single-TC chips (v5e/v6e),
    # keep a parallel batch axis on dual-TC v7x so both TensorCores run.
    if batch_block is None:
        batch_block = 1 if (_is_dual_tensorcore_chip() and b > 1) else b
    nb = batch_block
    assert b % nb == 0
    g = b // nb

    # glue: x NCHW -> (b, c, t*w): a pure reshape (no transpose / pad / extra HBM copy).
    x_g = x.reshape(b, c, tw)

    # glue: dis (b, >=t, w, ks, 2) -> (g, 2, nb*ks*t*w), transposed + lane-dense.
    dis_t = jnp.transpose(dis[:, :t], (0, 4, 3, 1, 2)).reshape(b, 2, ks * tw)
    dis_g = jnp.transpose(dis_t.reshape(g, nb, 2, ks * tw), (0, 2, 1, 3))
    dis_g = dis_g.reshape(g, 2, nb * ks * tw)

    p_slab = pack_params(params, c, groups)

    kernel = functools.partial(_cpe_kernel, kernel_size=ks, width=w, t=t, c=c, nb=nb)

    out = pl.pallas_call(
        kernel,
        out_shape=jax.ShapeDtypeStruct((b, c, tw), x.dtype),
        grid_spec=pltpu.PrefetchScalarGridSpec(
            num_scalar_prefetch=0,
            grid=(g,),
            in_specs=[
                pl.BlockSpec((1, 2, nb * ks * tw), lambda i: (i, 0, 0)),
                pl.BlockSpec((nb, c, tw), lambda i: (i, 0, 0)),
                pl.BlockSpec(p_slab.shape, lambda i: (0, 0)),
            ],
            out_specs=pl.BlockSpec((nb, c, tw), lambda i: (i, 0, 0)),
        ),
        compiler_params=pltpu.CompilerParams(
            dimension_semantics=("parallel",),
        ),
    )(dis_g, x_g, p_slab)

    # glue: (b, c, t*w) -> NCHW (b, c, t, w): pure reshape, no transpose.
    return out.reshape(b, c, t, w)


def cpe_reference(x, dis, params, *, kernel_size, groups):
    """Pure-JAX reference of the PyTorch forward (eval mode)."""
    b, c, t, w = x.shape
    pad = (kernel_size - 1) // 2
    (w1, b1, w2, b2, w3, b3, wv, bv) = params
    h = jnp.maximum(dis[:, :t] @ w1 + b1[0], 0.0)
    h = jnp.maximum(h @ w2 + b2[0], 0.0)
    logits = h @ w3 + b3[0]                                           # (b,t,w,ks,g)
    attn = jax.nn.softmax(logits, axis=3)
    x_nhwc = jnp.transpose(x, (0, 2, 3, 1))
    xp = jnp.pad(x_nhwc, ((0, 0), (pad, pad), (0, 0), (0, 0)))
    patches = jnp.stack([xp[:, j:j + t] for j in range(kernel_size)], axis=3)  # (b,t,w,ks,c)
    v = patches @ wv + bv[0]                                          # (b,t,w,ks,c)
    hd = c // groups
    v = v.reshape(b, t, w, kernel_size, groups, hd)
    out = jnp.einsum('btwkg,btwkgd->btwgd', attn, v).reshape(b, t, w, c)
    return jnp.transpose(out, (0, 3, 1, 2))


if __name__ == "__main__":
    B, C, T, W = 2, 16, 16, 8
    GROUPS, KS = 4, 3          # stride = 1 (required by the original reshape logic)

    key = jax.random.PRNGKey(0)
    kx, kd, kp = jax.random.split(key, 3)
    x = jax.random.normal(kx, (B, C, T, W), jnp.float32)
    # dis: per (b, t, w) position, a 2-d distance feature for each of the ks neighbours.
    dis = jax.random.normal(kd, (B, T, W, KS, 2), jnp.float32)
    params = init_params(kp, C, GROUPS)

    out = cpe_forward(x, dis, params, kernel_size=KS, groups=GROUPS)
    out = jax.block_until_ready(out)

    ref = cpe_reference(x, dis, params, kernel_size=KS, groups=GROUPS)
    assert out.shape == (B, C, T, W)
    assert jnp.allclose(out, ref, atol=3e-2, rtol=3e-2), float(jnp.max(jnp.abs(out - ref)))
    print("KERNEL_OK")
</pallas_src>

<mosaic_0001>
module attributes {stable_mosaic.version = 11 : i64} {
  func.func @_cpe_kernel(%arg0: i32, %arg1: memref<1x2x768xf32, #tpu.memory_space<vmem>>, %arg2: memref<2x16x128xf32, #tpu.memory_space<vmem>>, %arg3: memref<160x128xf32, #tpu.memory_space<vmem>>, %arg4: memref<2x16x128xf32, #tpu.memory_space<vmem>>) attributes {dimension_semantics = [#tpu.dimension_semantics<parallel>], iteration_bounds = array<i64: 1>, scalar_prefetch = 0 : i64, scratch_operands = 0 : i64, tpu.core_type = #tpu.core_type<tc>, window_params = [{transform_indices = @transform_0, window_bounds = array<i64: 1, 2, 768>}, {transform_indices = @transform_1, window_bounds = array<i64: 2, 16, 128>}, {pipeline_mode = #tpu.pipeline_mode<synchronous>, transform_indices = @transform_2, window_bounds = array<i64: 160, 128>}, {transform_indices = @transform_3, window_bounds = array<i64: 2, 16, 128>}]} {
    %c0 = arith.constant 0 : index
    %c0_0 = arith.constant 0 : index
    %0 = vector.load %arg3[%c0, %c0_0] : memref<160x128xf32, #tpu.memory_space<vmem>>, vector<128x128xf32>
    %c0_1 = arith.constant 0 : index
    %c64 = arith.constant 64 : index
    %1 = vector.load %arg3[%c0_1, %c64] : memref<160x128xf32, #tpu.memory_space<vmem>>, vector<128x1xf32>
    %c0_2 = arith.constant 0 : index
    %c65 = arith.constant 65 : index
    %2 = vector.load %arg3[%c0_2, %c65] : memref<160x128xf32, #tpu.memory_space<vmem>>, vector<128x1xf32>
    %c0_3 = arith.constant 0 : index
    %c66 = arith.constant 66 : index
    %3 = vector.load %arg3[%c0_3, %c66] : memref<160x128xf32, #tpu.memory_space<vmem>>, vector<128x1xf32>
    %c0_4 = arith.constant 0 : index
    %c67 = arith.constant 67 : index
    %4 = vector.load %arg3[%c0_4, %c67] : memref<160x128xf32, #tpu.memory_space<vmem>>, vector<128x1xf32>
    %c128 = arith.constant 128 : index
    %c0_5 = arith.constant 0 : index
    %5 = vector.load %arg3[%c128, %c0_5] : memref<160x128xf32, #tpu.memory_space<vmem>>, vector<16x128xf32>
    %c144 = arith.constant 144 : index
    %c0_6 = arith.constant 0 : index
    %6 = vector.load %arg3[%c144, %c0_6] : memref<160x128xf32, #tpu.memory_space<vmem>>, vector<16x16xf32>
    %c144_7 = arith.constant 144 : index
    %c16 = arith.constant 16 : index
    %7 = vector.load %arg3[%c144_7, %c16] : memref<160x128xf32, #tpu.memory_space<vmem>>, vector<16x1xf32>
    %c144_8 = arith.constant 144 : index
    %c17 = arith.constant 17 : index
    %8 = vector.load %arg3[%c144_8, %c17] : memref<160x128xf32, #tpu.memory_space<vmem>>, vector<16x1xf32>
    %9 = arith.truncf %0 : vector<128x128xf32> to vector<128x128xbf16>
    %10 = arith.truncf %5 : vector<16x128xf32> to vector<16x128xbf16>
    %11 = arith.truncf %6 : vector<16x16xf32> to vector<16x16xbf16>
    %12 = vector.shape_cast %7 : vector<16x1xf32> to vector<16x1xf32>
    %13 = vector.broadcast %12 : vector<16x1xf32> to vector<16x8xf32>
    %c0_9 = arith.constant 0 : index
    %c0_10 = arith.constant 0 : index
    %c0_11 = arith.constant 0 : index
    %14 = vector.load %arg1[%c0_9, %c0_10, %c0_11] : memref<1x2x768xf32, #tpu.memory_space<vmem>>, vector<1x2x768xf32>
    %15 = vector.shape_cast %14 : vector<1x2x768xf32> to vector<2x768xf32>
    %16 = vector.extract_strided_slice %15 {offsets = [0, 0], sizes = [1, 768], strides = [1, 1]} : vector<2x768xf32> to vector<1x768xf32>
    %17 = vector.extract_strided_slice %15 {offsets = [1, 0], sizes = [1, 768], strides = [1, 1]} : vector<2x768xf32> to vector<1x768xf32>
    %18 = vector.broadcast %1 : vector<128x1xf32> to vector<128x768xf32>
    %19 = vector.broadcast %16 : vector<1x768xf32> to vector<128x768xf32>
    %20 = arith.mulf %18, %19 : vector<128x768xf32>
    %21 = vector.broadcast %2 : vector<128x1xf32> to vector<128x768xf32>
    %22 = vector.broadcast %17 : vector<1x768xf32> to vector<128x768xf32>
    %23 = arith.mulf %21, %22 : vector<128x768xf32>
    %24 = arith.addf %20, %23 : vector<128x768xf32>
    %25 = vector.broadcast %3 : vector<128x1xf32> to vector<128x768xf32>
    %26 = arith.addf %24, %25 : vector<128x768xf32>
    %cst = arith.constant 0.000000e+00 : f32
    %27 = vector.broadcast %cst : f32 to vector<128x768xf32>
    %28 = arith.maximumf %26, %27 : vector<128x768xf32>
    %29 = arith.truncf %28 : vector<128x768xf32> to vector<128x768xbf16>
    %cst_12 = arith.constant dense<0.000000e+00> : vector<128x768xf32>
    %30 = tpu.matmul %9, %29, %cst_12 {dimension_numbers = #tpu.dot_dimension_numbers<[1], [0], [0], [1], [0, 0, 1, 1], [], []>} : vector<128x128xbf16>, vector<128x768xbf16>, vector<128x768xf32> -> vector<128x768xf32>
    %31 = vector.broadcast %4 : vector<128x1xf32> to vector<128x768xf32>
    %32 = arith.addf %30, %31 : vector<128x768xf32>
    %cst_13 = arith.constant 0.000000e+00 : f32
    %33 = vector.broadcast %cst_13 : f32 to vector<128x768xf32>
    %34 = arith.maximumf %32, %33 : vector<128x768xf32>
    %35 = arith.truncf %34 : vector<128x768xf32> to vector<128x768xbf16>
    %cst_14 = arith.constant dense<0.000000e+00> : vector<16x768xf32>
    %36 = tpu.matmul %10, %35, %cst_14 {dimension_numbers = #tpu.dot_dimension_numbers<[1], [0], [0], [1], [0, 0, 1, 1], [], []>} : vector<16x128xbf16>, vector<128x768xbf16>, vector<16x768xf32> -> vector<16x768xf32>
    %37 = vector.broadcast %8 : vector<16x1xf32> to vector<16x768xf32>
    %38 = arith.addf %36, %37 : vector<16x768xf32>
    %c0_15 = arith.constant 0 : index
    %c0_16 = arith.constant 0 : index
    %c0_17 = arith.constant 0 : index
    %39 = vector.load %arg2[%c0_15, %c0_16, %c0_17] : memref<2x16x128xf32, #tpu.memory_space<vmem>>, vector<1x16x128xf32>
    %40 = vector.shape_cast %39 : vector<1x16x128xf32> to vector<16x128xf32>
    %c1 = arith.constant 1 : index
    %c0_18 = arith.constant 0 : index
    %c0_19 = arith.constant 0 : index
    %41 = vector.load %arg2[%c1, %c0_18, %c0_19] : memref<2x16x128xf32, #tpu.memory_space<vmem>>, vector<1x16x128xf32>
    %42 = vector.shape_cast %41 : vector<1x16x128xf32> to vector<16x128xf32>
    %43 = tpu.concatenate %40, %42 in 1 : vector<16x128xf32>, vector<16x128xf32> -> vector<16x256xf32>
    %44 = arith.truncf %43 : vector<16x256xf32> to vector<16x256xbf16>
    %cst_20 = arith.constant dense<0.000000e+00> : vector<16x256xf32>
    %45 = tpu.matmul %11, %44, %cst_20 {dimension_numbers = #tpu.dot_dimension_numbers<[1], [0], [0], [1], [0, 0, 1, 1], [], []>} : vector<16x16xbf16>, vector<16x256xbf16>, vector<16x256xf32> -> vector<16x256xf32>
    %46 = vector.broadcast %7 : vector<16x1xf32> to vector<16x256xf32>
    %47 = arith.addf %45, %46 : vector<16x256xf32>
    %48 = vector.extract_strided_slice %38 {offsets = [0, 0], sizes = [16, 128], strides = [1, 1]} : vector<16x768xf32> to vector<16x128xf32>
    %49 = vector.extract_strided_slice %38 {offsets = [0, 128], sizes = [16, 128], strides = [1, 1]} : vector<16x768xf32> to vector<16x128xf32>
    %50 = vector.extract_strided_slice %38 {offsets = [0, 256], sizes = [16, 128], strides = [1, 1]} : vector<16x768xf32> to vector<16x128xf32>
    %51 = arith.maximumf %48, %49 : vector<16x128xf32>
    %52 = arith.maximumf %51, %50 : vector<16x128xf32>
    %53 = arith.subf %48, %52 : vector<16x128xf32>
    %54 = math.exp %53 : vector<16x128xf32>
    %55 = arith.subf %49, %52 : vector<16x128xf32>
    %56 = math.exp %55 : vector<16x128xf32>
    %57 = arith.subf %50, %52 : vector<16x128xf32>
    %58 = math.exp %57 : vector<16x128xf32>
    %59 = arith.addf %54, %56 : vector<16x128xf32>
    %60 = arith.addf %59, %58 : vector<16x128xf32>
    %61 = tpu.reciprocal %60 {approx = true} : vector<16x128xf32> -> vector<16x128xf32>
    %62 = vector.extract_strided_slice %47 {offsets = [0, 0], sizes = [16, 128], strides = [1, 1]} : vector<16x256xf32> to vector<16x128xf32>
    %63 = tpu.concatenate %13, %62, %13 in 1 : vector<16x8xf32>, vector<16x128xf32>, vector<16x8xf32> -> vector<16x144xf32>
    %cst_21 = arith.constant 0.000000e+00 : f32
    %64 = vector.broadcast %cst_21 : f32 to vector<16x128xf32>
    %65 = vector.extract_strided_slice %63 {offsets = [0, 0], sizes = [16, 128], strides = [1, 1]} : vector<16x144xf32> to vector<16x128xf32>
    %66 = arith.mulf %54, %61 : vector<16x128xf32>
    %67 = arith.mulf %66, %65 : vector<16x128xf32>
    %68 = arith.addf %64, %67 : vector<16x128xf32>
    %69 = vector.extract_strided_slice %63 {offsets = [0, 8], sizes = [16, 128], strides = [1, 1]} : vector<16x144xf32> to vector<16x128xf32>
    %70 = arith.mulf %56, %61 : vector<16x128xf32>
    %71 = arith.mulf %70, %69 : vector<16x128xf32>
    %72 = arith.addf %68, %71 : vector<16x128xf32>
    %73 = vector.extract_strided_slice %63 {offsets = [0, 16], sizes = [16, 128], strides = [1, 1]} : vector<16x144xf32> to vector<16x128xf32>
    %74 = arith.mulf %58, %61 : vector<16x128xf32>
    %75 = arith.mulf %74, %73 : vector<16x128xf32>
    %76 = arith.addf %72, %75 : vector<16x128xf32>
    %c0_22 = arith.constant 0 : index
    %c0_23 = arith.constant 0 : index
    %c0_24 = arith.constant 0 : index
    %77 = vector.load %arg4[%c0_22, %c0_23, %c0_24] : memref<2x16x128xf32, #tpu.memory_space<vmem>>, vector<1x16x128xf32>
    %78 = vector.shape_cast %77 : vector<1x16x128xf32> to vector<16x128xf32>
    %79 = vector.shape_cast %76 : vector<16x128xf32> to vector<1x16x128xf32>
    tpu.vector_store %arg4[%c0_22, %c0_23, %c0_24], %79 {strides = array<i32>} : memref<2x16x128xf32, #tpu.memory_space<vmem>>, vector<1x16x128xf32>,
    %80 = vector.extract_strided_slice %38 {offsets = [0, 384], sizes = [16, 128], strides = [1, 1]} : vector<16x768xf32> to vector<16x128xf32>
    %81 = vector.extract_strided_slice %38 {offsets = [0, 512], sizes = [16, 128], strides = [1, 1]} : vector<16x768xf32> to vector<16x128xf32>
    %82 = vector.extract_strided_slice %38 {offsets = [0, 640], sizes = [16, 128], strides = [1, 1]} : vector<16x768xf32> to vector<16x128xf32>
    %83 = arith.maximumf %80, %81 : vector<16x128xf32>
    %84 = arith.maximumf %83, %82 : vector<16x128xf32>
    %85 = arith.subf %80, %84 : vector<16x128xf32>
    %86 = math.exp %85 : vector<16x128xf32>
    %87 = arith.subf %81, %84 : vector<16x128xf32>
    %88 = math.exp %87 : vector<16x128xf32>
    %89 = arith.subf %82, %84 : vector<16x128xf32>
    %90 = math.exp %89 : vector<16x128xf32>
    %91 = arith.addf %86, %88 : vector<16x128xf32>
    %92 = arith.addf %91, %90 : vector<16x128xf32>
    %93 = tpu.reciprocal %92 {approx = true} : vector<16x128xf32> -> vector<16x128xf32>
    %94 = vector.extract_strided_slice %47 {offsets = [0, 128], sizes = [16, 128], strides = [1, 1]} : vector<16x256xf32> to vector<16x128xf32>
    %95 = tpu.concatenate %13, %94, %13 in 1 : vector<16x8xf32>, vector<16x128xf32>, vector<16x8xf32> -> vector<16x144xf32>
    %cst_25 = arith.constant 0.000000e+00 : f32
    %96 = vector.broadcast %cst_25 : f32 to vector<16x128xf32>
    %97 = vector.extract_strided_slice %95 {offsets = [0, 0], sizes = [16, 128], strides = [1, 1]} : vector<16x144xf32> to vector<16x128xf32>
    %98 = arith.mulf %86, %93 : vector<16x128xf32>
    %99 = arith.mulf %98, %97 : vector<16x128xf32>
    %100 = arith.addf %96, %99 : vector<16x128xf32>
    %101 = vector.extract_strided_slice %95 {offsets = [0, 8], sizes = [16, 128], strides = [1, 1]} : vector<16x144xf32> to vector<16x128xf32>
    %102 = arith.mulf %88, %93 : vector<16x128xf32>
    %103 = arith.mulf %102, %101 : vector<16x128xf32>
    %104 = arith.addf %100, %103 : vector<16x128xf32>
    %105 = vector.extract_strided_slice %95 {offsets = [0, 16], sizes = [16, 128], strides = [1, 1]} : vector<16x144xf32> to vector<16x128xf32>
    %106 = arith.mulf %90, %93 : vector<16x128xf32>
    %107 = arith.mulf %106, %105 : vector<16x128xf32>
    %108 = arith.addf %104, %107 : vector<16x128xf32>
    %c1_26 = arith.constant 1 : index
    %c0_27 = arith.constant 0 : index
    %c0_28 = arith.constant 0 : index
    %109 = vector.load %arg4[%c1_26, %c0_27, %c0_28] : memref<2x16x128xf32, #tpu.memory_space<vmem>>, vector<1x16x128xf32>
    %110 = vector.shape_cast %109 : vector<1x16x128xf32> to vector<16x128xf32>
    %111 = vector.shape_cast %108 : vector<16x128xf32> to vector<1x16x128xf32>
    tpu.vector_store %arg4[%c1_26, %c0_27, %c0_28], %111 {strides = array<i32>} : memref<2x16x128xf32, #tpu.memory_space<vmem>>, vector<1x16x128xf32>,
    return
  }
  func.func @transform_0(%arg0: i32) -> (i32, i32, i32) {
    %c0_i32 = arith.constant 0 : i32
    %c0_i32_0 = arith.constant 0 : i32
    %c0_i32_1 = arith.constant 0 : i32
    return %arg0, %c0_i32, %c0_i32_0 : i32, i32, i32
  }
  func.func @transform_1(%arg0: i32) -> (i32, i32, i32) {
    %c0_i32 = arith.constant 0 : i32
    %c0_i32_0 = arith.constant 0 : i32
    %c0_i32_1 = arith.constant 0 : i32
    return %arg0, %c0_i32, %c0_i32_0 : i32, i32, i32
  }
  func.func @transform_2(%arg0: i32) -> (i32, i32) {
    %c0_i32 = arith.constant 0 : i32
    %c0_i32_0 = arith.constant 0 : i32
    %c0_i32_1 = arith.constant 0 : i32
    return %c0_i32, %c0_i32_0 : i32, i32
  }
  func.func @transform_3(%arg0: i32) -> (i32, i32, i32) {
    %c0_i32 = arith.constant 0 : i32
    %c0_i32_0 = arith.constant 0 : i32
    %c0_i32_1 = arith.constant 0 : i32
    return %arg0, %c0_i32, %c0_i32_0 : i32, i32, i32
  }
}

</mosaic_0001>

<bundles_post_ra>
// kernel: tpu_custom_call.1
= control target key start
LH: loop header
LB: loop body
LE: loop exit
PB: predicated region body
PF: predicated region fallthrough
CT: control target
= control target key end

     0   :  { %8 = vsyncpa [#allocation3], 0  ;;  %s3358_s0 = inlined_call_operand.hbm [shape: f32[1,2,768], index: 0, kind: input, shape index: {}]   ;;  %s3359_s1 = inlined_call_operand.hbm [shape: f32[2,16,128], index: 1, kind: input, shape index: {}]   ;;  %s3360_s2 = inlined_call_operand.hbm [shape: f32[160,128], index: 2, kind: input, shape index: {}]   ;;  %s3361_s3 = inlined_call_operand.hbm [shape: f32[2,16,128], index: 3, kind: output, shape index: {}]  }
   0x1   :  { %9 = vsyncpa [#allocation6], 0  ;;  %s26_s14 = sshll.u32 %s3359_s1, 4  ;;  %s27_s14 = int_to_ptr.hbm [resolvable:$true] %s26_s14 }
   0x2   :  { %10 = vsyncpa [#allocation4], 0  ;;  %s1918_s15 = smov [#allocation5]   ;;  %s16_s19 = sshll.u32 %s3358_s0, 4  ;;  %s17_s19 = int_to_ptr.hbm [resolvable:$true] %s16_s19 }
   0x3   :  { %s28_s16 = sshll.u32 %s1918_s15, 4  ;;  %s1919_s20 = smov 128   ;;  %s29_s16 = int_to_ptr.vmem [resolvable:$true] %s28_s16 }
   0x4   :  { %s1920_s21 = smov 8   ;;  %s1921_s22 = smov [#allocation2]  }
   0x5   :  { %34 = dma.hbm_to_vmem [thread:$0]  %s27_s14, 512, %s29_s16, [#allocation6], %s1919_s20, %s1919_s20, %s1920_s21  }
   0x6   :  { %s18_s23 = sshll.u32 %s1921_s22, 4  ;;  %s39_s25 = sshll.u32 %s3360_s2, 4  ;;  %s19_s23 = int_to_ptr.vmem [resolvable:$true] %s18_s23  ;;  %s40_s25 = int_to_ptr.hbm [resolvable:$true] %s39_s25 }
   0x7   :  { %21 = dma.hbm_to_vmem [thread:$0]  %s17_s19, 192, %s19_s23, [#allocation3]  }
   0x8   :  { %s1922_s26 = smov [#allocation7]  }
   0x9   :  { %s41_s27 = sshll.u32 %s1922_s26, 4  ;;  %s42_s27 = int_to_ptr.vmem [resolvable:$true] %s41_s27 }
   0xa   :  { %47 = dma.hbm_to_vmem [thread:$0]  %s40_s25, 2560, %s42_s27, [#allocation6], %s1919_s20, %s1919_s20, %s1920_s21  }
   0xb   :  { %1912 = dma.done.wait [#allocation3], 192  }
   0xc   :  { %1913 = vsyncadd [#allocation3], 4294967104 }
   0xd   :  { %1914 = dma.done.wait [#allocation6], 3072  }
   0xe   :  { %1915 = vsyncadd [#allocation6], 4294964224  ;;  %v1923_v0 = vmov 65   ;;  %v1924_v1 = vmov 64   ;;  %v1970_v2 = vld [vmem:[#allocation7 + $0x70] sm:$0xff]  ;;  %v1972_v3 = vld [vmem:[#allocation7 + $0x60] sm:$0xff] }
   0xf   :  { %1728 = vset.pattern.permute.xlu0 %v1923_v0  ;;  %1726 = vset.pattern.permute.xlu1 %v1923_v0  ;;  %3418 = vst [vmem:[#allocation12_spill] sm:$0xff] %v1970_v2  ;;  %v1977_v4 = vld [vmem:[#allocation7 + $0x78] sm:$0xff]  ;;  %v70_v5 = vld [vmem:[#allocation7 + $0x48] sm:$0xff]  ;;  %v67_v7 = vld [vmem:[#allocation7 + $0x30] sm:$0xff]  ;;  %v1925_v8 = vmov 66   ;;  %vm1478_vm0 = vcmask 130048  }
  0x10   :  { %1727 = vset.pattern.permute.xlu2 %v1924_v1  ;;  %3419 = vst [vmem:[#allocation13_spill] sm:$0xff] %v1972_v3  ;;  %356 = vperm.xlu1 %1726, %v1970_v2   ;;  %v1979_v6 = vld [vmem:[#allocation7 + $0x68] sm:$0xff]  ;;  %v1988_v9 = vld [vmem:[#allocation7 + $0x50] sm:$0xff]  ;;  %v1994_v10 = vld [vmem:[#allocation7 + $0x58] sm:$0xff]  ;;  %vm1546_vm1 = vcmask 64512   ;;  %s1929_s0 = smov 112  }
  0x11   :  { %348 = vperm.xlu0 %1728, %v1972_v3   ;;  %165 = vperm.xlu2 %1727, %v1972_v3   ;;  %3420 = vst [vmem:[#allocation14_spill] sm:$0xff] %v1977_v4  ;;  %v2007_v11 = vld [vmem:[#allocation7 + $0x40] sm:$0xff]  ;;  %v68_v12 = vld [vmem:[#allocation7 + $0x38] sm:$0xff]  ;;  %v66_v16 = vld [vmem:[#allocation7 + $0x28] sm:$0xff]  ;;  %s1930_s2 = smov 120   ;;  %vm1590_vm2 = vcmask 916480  }
  0x12   :  { %3421 = vst [vmem:[#allocation15_spill] sm:$0xff] %v1979_v6  ;;  %v2019_v13 = vld [vmem:[#allocation7 + $0x18] sm:$0xff]  ;;  %v2023_v14 = vld [vmem:[#allocation7] sm:$0xff]  ;;  %v2037_v19 = vld [vmem:[#allocation7 + $0x8] sm:$0xff]  ;;  %vm1571_vm3 = vcmask 982016   ;;  %s1931_s28 = smov [#allocation8]  }
  0x13   :  { %3422 = vst [vmem:[#allocation16_spill] sm:$0xff] %v1988_v9  ;;  %v65_v15 = vld [vmem:[#allocation7 + $0x20] sm:$0xff]  ;;  %v2041_v20 = vld [vmem:[#allocation7 + $0x10] sm:$0xff]  ;;  %v102_v22 = vld [vmem:[#allocation2 + $0x8] sm:$0xf]  ;;  %s1694_s29 = sshll.u32 %s1931_s28, 4  ;;  %s1695_s29 = int_to_ptr.vmem [resolvable:$true] %s1694_s29 }
  0x14   :  { %3423 = vst [vmem:[#allocation17_spill] sm:$0xff] %v1994_v10  ;;  %v189_v25 = vperm.slane %v102_v22, 0  ;;  %v367_v26 = vperm.slane %v102_v22, 1  ;;  %v190_v28 = vperm.slane %v102_v22, 2  ;;  %v368_v30 = vperm.slane %v102_v22, 3  ;;  %v101_v44 = vld [vmem:[#allocation2] sm:$0xff] }
  0x15   :  { %3424 = vst [vmem:[#allocation18_spill] sm:$0xff] %v2007_v11  ;;  %v185_v46 = vperm.slane %v101_v44, 0  ;;  %v186_v47 = vperm.slane %v101_v44, 2  ;;  %v187_v48 = vperm.slane %v101_v44, 4  ;;  %v188_v49 = vperm.slane %v101_v44, 6  ;;  %s1696_s5 = sshll.u32 %s3361_s3, 4  ;;  %s1697_s5 = int_to_ptr.hbm [resolvable:$true] %s1696_s5 }
  0x16   :  { %v2057_v29 = vperm.slane %v189_v25, 0  ;;  %v2059_v31 = vperm.slane %v367_v26, 1  ;;  %v2065_v34 = vperm.slane %v190_v28, 0  ;;  %v2068_v35 = vperm.slane %v368_v30, 1 }
  0x17   :  { %v363_v50 = vperm.slane %v101_v44, 1  ;;  %v364_v51 = vperm.slane %v101_v44, 3  ;;  %v365_v52 = vperm.slane %v101_v44, 5  ;;  %v2091_v53 = vperm.slane %v185_v46, 0 }
  0x18   :  { %360 = vperm.xlu1 %1726, %v1977_v4   ;;  %3428 = vst [vmem:[#allocation22_spill] sm:$0xff] %v2059_v31  ;;  %v366_v54 = vperm.slane %v101_v44, 7  ;;  %v2095_v56 = vperm.slane %v186_v47, 0  ;;  %v2097_v57 = vperm.slane %v187_v48, 0  ;;  %v2099_v58 = vperm.slane %v188_v49, 0 }
  0x19   :  { %336 = vperm.xlu0 %1728, %v70_v5   ;;  %170 = vperm.xlu2 %1727, %v1979_v6   ;;  %3430 = vst [vmem:[#allocation24_spill] sm:$0xff] %v2065_v34  ;;  %v2105_v61 = vperm.slane %v363_v50, 1  ;;  %v2107_v62 = vperm.slane %v364_v51, 1  ;;  %v2109_v63 = vperm.slane %v365_v52, 1 }
  0x1a   :  { %3431 = vst [vmem:[#allocation25_spill] sm:$0xff] %v2068_v35 }
  0x20   :  { %352 = vperm.xlu1 %1726, %v1979_v6  }
  0x21   :  { %324 = vperm.xlu0 %1728, %v67_v7   ;;  %1729 = vset.pattern.permute.xlu2 %v1925_v8 }
  0x22   :  { %630 = vperm.xlu2 %1729, %v1970_v2  }
  0x28   :  { %1730 = vset.pattern.permute.xlu1 %v1925_v8 }
  0x29   :  { %1744 = vset.pattern.permute.xlu0 %v1925_v8  ;;  %634 = vperm.xlu1 %1730, %v1977_v4  }
  0x2a   :  { %610 = vperm.xlu0 %1744, %v70_v5   ;;  %1731 = vset.pattern.permute.xlu2 %v1924_v1 }
  0x2b   :  { %155 = vperm.xlu2 %1731, %v1988_v9  }
  0x31   :  { %1732 = vset.pattern.permute.xlu1 %v1923_v0 }
  0x32   :  { %598 = vperm.xlu0 %1744, %v67_v7   ;;  %340 = vperm.xlu1 %1732, %v1988_v9  }
  0x33   :  { %1733 = vset.pattern.permute.xlu2 %v1923_v0 }
  0x34   :  { %344 = vperm.xlu2 %1733, %v1994_v10  }
  0x3a   :  { %1749 = vset.pattern.permute.xlu0 %v1924_v1  ;;  %1734 = vset.pattern.permute.xlu1 %v1925_v8 }
  0x3b   :  { %175 = vperm.xlu0 %1749, %v1970_v2   ;;  %622 = vperm.xlu1 %1734, %v1972_v3  }
  0x3c   :  { %1735 = vset.pattern.permute.xlu2 %v1925_v8 }
  0x3d   :  { %626 = vperm.xlu2 %1735, %v1979_v6  }
  0x43   :  { %180 = vperm.xlu0 %1749, %v1977_v4   ;;  %1736 = vset.pattern.permute.xlu1 %v1924_v1 }
  0x44   :  { %150 = vperm.xlu1 %1736, %v70_v5  }
  0x45   :  { %1737 = vset.pattern.permute.xlu2 %v1923_v0 }
  0x46   :  { %332 = vperm.xlu2 %1737, %v2007_v11  }
  0x4b   :  { %160 = vperm.xlu0 %1749, %v1994_v10  }
  0x4c   :  { %1738 = vset.pattern.permute.xlu1 %v1925_v8 }
  0x4d   :  { %614 = vperm.xlu1 %1738, %v1988_v9  }
  0x4e   :  { %1739 = vset.pattern.permute.xlu2 %v1925_v8 }
  0x4f   :  { %618 = vperm.xlu2 %1739, %v1994_v10  }
  0x53   :  { %145 = vperm.xlu0 %1749, %v2007_v11  }
  0x55   :  { %1740 = vset.pattern.permute.xlu1 %v1924_v1 }
  0x56   :  { %135 = vperm.xlu1 %1740, %v67_v7  }
  0x57   :  { %1741 = vset.pattern.permute.xlu2 %v1924_v1 }
  0x58   :  { %140 = vperm.xlu2 %1741, %v68_v12  }
  0x5b   :  { %120 = vperm.xlu0 %1749, %v2019_v13  }
  0x5e   :  { %1742 = vset.pattern.permute.xlu1 %v1923_v0 }
  0x5f   :  { %328 = vperm.xlu1 %1742, %v68_v12  }
  0x60   :  { %1743 = vset.pattern.permute.xlu2 %v1925_v8 }
  0x61   :  { %606 = vperm.xlu2 %1743, %v2007_v11  }
  0x63   :  { %105 = vperm.xlu0 %1749, %v2023_v14  }
  0x67   :  { %1745 = vset.pattern.permute.xlu1 %v1924_v1 }
  0x68   :  { %125 = vperm.xlu1 %1745, %v65_v15  }
  0x69   :  { %1746 = vset.pattern.permute.xlu2 %v1924_v1 }
  0x6a   :  { %130 = vperm.xlu2 %1746, %v66_v16  }
  0x6b   :  { %1758 = vset.pattern.permute.xlu0 %v1923_v0  ;;  %v2031_v17 = vpop.permute.xlu2 %165 }
  0x6c   :  { %304 = vperm.xlu0 %1758, %v2037_v19   ;;  %v279_v36 = vmul.f32 %v2057_v29, %v2031_v17  ;;  %v280_v38 = vmul.f32 %v2065_v34, %v2031_v17  ;;  %v278_v22 = vmul.f32 %v2099_v58, %v2031_v17 }
  0x70   :  { %1747 = vset.pattern.permute.xlu1 %v1923_v0 }
  0x71   :  { %316 = vperm.xlu1 %1747, %v65_v15  }
  0x72   :  { %1748 = vset.pattern.permute.xlu2 %v1923_v0 }
  0x73   :  { %320 = vperm.xlu2 %1748, %v66_v16   ;;  %v2035_v18 = vpop.permute.xlu2 %170 }
  0x74   :  { %v285_v5 = vmul.f32 %v2057_v29, %v2035_v18  ;;  %v282_v26 = vmul.f32 %v2095_v56, %v2035_v18 }
  0x79   :  { %1750 = vset.pattern.permute.xlu1 %v1925_v8 }
  0x7a   :  { %602 = vperm.xlu1 %1750, %v68_v12   ;;  %v281_v12 = vmul.f32 %v2091_v53, %v2035_v18 }
  0x7b   :  { %1751 = vset.pattern.permute.xlu2 %v1924_v1 }
  0x7c   :  { %115 = vperm.xlu2 %1751, %v2041_v20   ;;  %v2045_v21 = vpop.permute.xlu2 %630 }
  0x7d   :  { %3425 = vst [vmem:[#allocation19_spill] sm:$0xff] %v2045_v21 }
  0x82   :  { %v2047_v23 = vpop.permute.xlu1 %356  ;;  %1752 = vset.pattern.permute.xlu1 %v1923_v0 }
  0x83   :  { %3426 = vst [vmem:[#allocation20_spill] sm:$0xff] %v2047_v23  ;;  %v2049_v24 = vpop.permute.xlu0 %348  ;;  %308 = vperm.xlu1 %1752, %v2041_v20   ;;  %v465_v50 = vmul.f32 %v2105_v61, %v2047_v23  ;;  %v2173_v11 = vmul.f32 %v2059_v31, %v2047_v23 }
  0x84   :  { %1753 = vset.pattern.permute.xlu2 %v1923_v0  ;;  %v457_v37 = vmul.f32 %v2059_v31, %v2049_v24  ;;  %v458_v41 = vmul.f32 %v2068_v35, %v2049_v24 }
  0x85   :  { %312 = vperm.xlu2 %1753, %v2019_v13   ;;  %v2055_v27 = vpop.permute.xlu2 %155 }
  0x86   :  { %3427 = vst [vmem:[#allocation21_spill] sm:$0xff] %v2055_v27  ;;  %v2079_v40 = vadd.f32 %v457_v37, %v279_v36  ;;  %v2085_v45 = vadd.f32 %v458_v41, %v280_v38  ;;  %v454_v38 = vmul.f32 %v2107_v62, %v2049_v24  ;;  %v283_v41 = vmul.f32 %v2097_v57, %v2035_v18 }
  0x88   :  { %3433 = vst [vmem:[#allocation27_spill] sm:$0xff] %v2079_v40 }
  0x89   :  { %3435 = vst [vmem:[#allocation29_spill] sm:$0xff] %v2085_v45 }
  0x8a   :  { %v2061_v32 = vpop.permute.xlu1 %360 }
  0x8b   :  { %v2063_v33 = vpop.permute.xlu0 %336  ;;  %1754 = vset.pattern.permute.xlu1 %v1925_v8 }
  0x8c   :  { %3429 = vst [vmem:[#allocation23_spill] sm:$0xff] %v2063_v33  ;;  %590 = vperm.xlu1 %1754, %v65_v15   ;;  %v276_v15 = vmul.f32 %v2095_v56, %v2031_v17 }
  0x8d   :  { %1755 = vset.pattern.permute.xlu2 %v1925_v8 }
  0x8e   :  { %594 = vperm.xlu2 %1755, %v66_v16   ;;  %v2077_v39 = vpop.permute.xlu2 %344  ;;  %v277_v16 = vmul.f32 %v2097_v57, %v2031_v17 }
  0x8f   :  { %3432 = vst [vmem:[#allocation26_spill] sm:$0xff] %v2077_v39 }
  0x92   :  { %v353_v42 = vpop.permute.xlu1 %352 }
  0x93   :  { %v2083_v43 = vpop.permute.xlu0 %324  ;;  %v463_v7 = vmul.f32 %v2059_v31, %v353_v42  ;;  %v459_v25 = vmul.f32 %v2105_v61, %v353_v42  ;;  %v464_v28 = vmul.f32 %v2068_v35, %v353_v42  ;;  %v460_v30 = vmul.f32 %v2107_v62, %v353_v42 }
  0x94   :  { %3434 = vst [vmem:[#allocation28_spill] sm:$0xff] %v2083_v43  ;;  %1756 = vset.pattern.permute.xlu1 %v1924_v1  ;;  %v275_v1 = vmul.f32 %v2091_v53, %v2031_v17  ;;  %v461_v36 = vmul.f32 %v2109_v63, %v353_v42  ;;  %v286_v17 = vmul.f32 %v2065_v34, %v2035_v18 }
  0x95   :  { %110 = vperm.xlu1 %1756, %v2037_v19   ;;  %v555_v51 = vadd.f32 %v459_v25, %v281_v12  ;;  %v550_v12 = vadd.f32 %v454_v38, %v276_v15  ;;  %v2201_v38 = vmul.f32 %v2107_v62, %v2061_v32 }
  0x96   :  { %1757 = vset.pattern.permute.xlu2 %v1923_v0  ;;  %v2112_v0 = vperm.slane %v366_v54, 1  ;;  %v560_v48 = vadd.f32 %v464_v28, %v286_v17  ;;  %v556_v54 = vadd.f32 %v460_v30, %v282_v26  ;;  %v263_v30 = vmul.f32 %v2091_v53, %v2055_v27 }
  0x97   :  { %300 = vperm.xlu2 %1757, %v2023_v14   ;;  %v2093_v55 = vpop.permute.xlu2 %626 }
  0x98   :  { %v462_v37 = vmul.f32 %v2112_v0, %v353_v42  ;;  %v455_v42 = vmul.f32 %v2109_v63, %v2049_v24  ;;  %v456_v46 = vmul.f32 %v2112_v0, %v2049_v24  ;;  %v468_v28 = vmul.f32 %v2112_v0, %v2047_v23 }
  0x99   :  { %v2191_v15 = vadd.f32 %v2093_v55, %v556_v54  ;;  %v2233_v54 = vmul.f32 %v2107_v62, %v2063_v33 }
  0x9a   :  { %v551_v25 = vadd.f32 %v455_v42, %v277_v16  ;;  %v552_v26 = vadd.f32 %v456_v46, %v278_v22  ;;  %v2221_v42 = vmul.f32 %v2109_v63, %v2077_v39  ;;  %v2225_v46 = vmul.f32 %v2112_v0, %v2077_v39 }
  0x9b   :  { %v2101_v59 = vpop.permute.xlu1 %634  ;;  %v812_v6 = vmax.f32 %v2191_v15, 0.0 }
  0x9c   :  { %v2103_v60 = vpop.permute.xlu0 %610 }
  0x9d   :  { %1759 = vset.pattern.permute.xlu1 %v1925_v8 }
  0x9e   :  { %582 = vperm.xlu1 %1759, %v2041_v20   ;;  %v559_v20 = vadd.f32 %v463_v7, %v285_v5  ;;  %v557_v5 = vadd.f32 %v461_v36, %v283_v41  ;;  %v715_v36 = vadd.f32 %v2093_v55, %v555_v51  ;;  %v2209_v41 = vmul.f32 %v2112_v0, %v2061_v32 }
  0x9f   :  { %1760 = vset.pattern.permute.xlu2 %v1925_v8  ;;  %v453_v8 = vmul.f32 %v2105_v61, %v2049_v24  ;;  %v2165_v24 = vadd.f32 %v2093_v55, %v560_v48  ;;  %v2229_v48 = vmul.f32 %v2105_v61, %v2063_v33 }
  0xa0   :  { %586 = vperm.xlu2 %1760, %v2019_v13   ;;  %v284_v13 = vmul.f32 %v2099_v58, %v2035_v18  ;;  %v2147_v44 = vpop.permute.xlu2 %332  ;;  %v2154_v47 = vadd.f32 %v2093_v55, %v559_v20  ;;  %v466_v18 = vmul.f32 %v2107_v62, %v2047_v23  ;;  %v467_v20 = vmul.f32 %v2109_v63, %v2047_v23 }
  0xa1   :  { %3436 = vst [vmem:[#allocation30_spill] sm:$0xff] %v2147_v44  ;;  %v549_v17 = vadd.f32 %v453_v8, %v275_v1  ;;  %v265_v1 = vmul.f32 %v2097_v57, %v2055_v27  ;;  %v266_v8 = vmul.f32 %v2099_v58, %v2055_v27  ;;  %v2194_v16 = vadd.f32 %v2093_v55, %v557_v5 }
  0xa2   :  { %3437 = vst [vmem:[#allocation31_spill] sm:$0xff] %v2154_v47  ;;  %v558_v7 = vadd.f32 %v462_v37, %v284_v13  ;;  %v264_v37 = vmul.f32 %v2095_v56, %v2055_v27  ;;  %v2213_v13 = vmul.f32 %v2105_v61, %v2077_v39  ;;  %v811_v51 = vmax.f32 %v715_v36, 0.0 }
  0xa3   :  { %3440 = vst [vmem:[#allocation34_spill] sm:$0xff] %v2165_v24  ;;  %v2237_v5 = vmul.f32 %v2109_v63, %v2063_v33  ;;  %v2278_v31 = vmul.f32 %v2107_v62, %v2147_v44 }
  0xa4   :  { %v2156_v49 = vpop.permute.xlu0 %598  ;;  %v2162_v52 = vpop.permute.xlu1 %340  ;;  %v2197_v22 = vadd.f32 %v2093_v55, %v558_v7  ;;  %v2217_v55 = vmul.f32 %v2107_v62, %v2077_v39  ;;  %v2241_v7 = vmul.f32 %v2112_v0, %v2063_v33 }
  0xa5   :  { %3438 = vst [vmem:[#allocation32_spill] sm:$0xff] %v2156_v49  ;;  %v441_v2 = vmul.f32 %v2105_v61, %v2162_v52  ;;  %v442_v45 = vmul.f32 %v2107_v62, %v2162_v52  ;;  %v443_v40 = vmul.f32 %v2109_v63, %v2162_v52  ;;  %v444_v34 = vmul.f32 %v2112_v0, %v2162_v52 }
  0xa6   :  { %3439 = vst [vmem:[#allocation33_spill] sm:$0xff] %v2162_v52  ;;  %574 = vperm.xlu1 %1759, %v2023_v14   ;;  %v2188_v14 = vmul.f32 %v2105_v61, %v2061_v32 }
  0xa8   :  { %578 = vperm.xlu2 %1760, %v2037_v19   ;;  %v2205_v19 = vmul.f32 %v2109_v63, %v2061_v32 }
  0xa9   :  { %v2245_v10 = vpop.permute.xlu2 %618 }
  0xad   :  { %v2243_v9 = vpop.permute.xlu0 %175  ;;  %v2252_v4 = vpop.permute.xlu1 %622 }
  0xae   :  { %3441 = vst [vmem:[#allocation35_spill] sm:$0xff] %v2252_v4  ;;  %v287_v39 = vmul.f32 %v2091_v53, %v2243_v9  ;;  %v288_v33 = vmul.f32 %v2095_v56, %v2243_v9  ;;  %v289_v49 = vmul.f32 %v2097_v57, %v2243_v9  ;;  %v290_v15 = vmul.f32 %v2099_v58, %v2243_v9 }
  0xaf   :  { %v709_v36 = vadd.f32 %v2252_v4, %v549_v17  ;;  %v710_v3 = vadd.f32 %v2252_v4, %v550_v12  ;;  %v711_v23 = vadd.f32 %v2252_v4, %v551_v25  ;;  %v712_v17 = vadd.f32 %v2252_v4, %v552_v26 }
  0xb0   :  { %v561_v27 = vadd.f32 %v465_v50, %v287_v39  ;;  %v562_v24 = vadd.f32 %v466_v18, %v288_v33  ;;  %v563_v47 = vadd.f32 %v467_v20, %v289_v49  ;;  %v564_v43 = vadd.f32 %v468_v28, %v290_v15 }
  0xb1   :  { %v805_v35 = vmax.f32 %v709_v36, 0.0  ;;  %v2274_v12 = vmul.f32 %v2105_v61, %v2147_v44  ;;  %v2282_v33 = vmul.f32 %v2109_v63, %v2147_v44  ;;  %v2286_v39 = vmul.f32 %v2112_v0, %v2147_v44 }
  0xb2   :  { %v721_v49 = vadd.f32 %v2045_v21, %v561_v27  ;;  %v722_v50 = vadd.f32 %v2045_v21, %v562_v24  ;;  %v723_v18 = vadd.f32 %v2045_v21, %v563_v47  ;;  %v806_v20 = vmax.f32 %v710_v3, 0.0 }
  0xb3   :  { %v537_v28 = vadd.f32 %v441_v2, %v263_v30  ;;  %v2291_v25 = vadd.f32 %v442_v45, %v264_v37  ;;  %v2293_v26 = vadd.f32 %v443_v40, %v265_v1  ;;  %v2295_v36 = vadd.f32 %v444_v34, %v266_v8  ;;  %v2312_v45 = vpop.permute.xlu2 %140 }
  0xb4   :  { %v724_v52 = vadd.f32 %v2045_v21, %v564_v43  ;;  %v2300_v44 = vpack.c.bf16 %v811_v51, %v805_v35  ;;  %v807_v4 = vmax.f32 %v711_v23, 0.0  ;;  %v808_v27 = vmax.f32 %v712_v17, 0.0  ;;  %3443 = vst [vmem:[#allocation37_spill] sm:$0xff] %v2312_v45 }
  0xb5   :  { %v2297_v15 = vpop.permute.xlu0 %180  ;;  %v817_v35 = vmax.f32 %v721_v49, 0.0  ;;  %v818_v43 = vmax.f32 %v722_v50, 0.0  ;;  %v819_v23 = vmax.f32 %v723_v18, 0.0  ;;  %v866_v47 = vpack.c.bf16 %v812_v6, %v806_v20 }
  0xb6   :  { %v293_v24 = vmul.f32 %v2091_v53, %v2297_v15  ;;  %v294_v2 = vmul.f32 %v2095_v56, %v2297_v15  ;;  %v295_v3 = vmul.f32 %v2097_v57, %v2297_v15  ;;  %v296_v34 = vmul.f32 %v2099_v58, %v2297_v15  ;;  %v2310_v40 = vpop.permute.xlu1 %150 }
  0xb7   :  { %3442 = vst [vmem:[#allocation36_spill] sm:$0xff] %v2310_v40  ;;  %v257_v51 = vmul.f32 %v2091_v53, %v2310_v40  ;;  %v258_v17 = vmul.f32 %v2095_v56, %v2310_v40  ;;  %v259_v49 = vmul.f32 %v2097_v57, %v2310_v40  ;;  %v260_v6 = vmul.f32 %v2099_v58, %v2310_v40 }
  0xb8   :  { %v567_v30 = vadd.f32 %v2188_v14, %v293_v24  ;;  %v568_v37 = vadd.f32 %v2201_v38, %v294_v2  ;;  %v569_v1 = vadd.f32 %v2205_v19, %v295_v3  ;;  %v570_v8 = vadd.f32 %v2209_v41, %v296_v34 }
  0xb9   :  { %v820_v50 = vmax.f32 %v724_v52, 0.0  ;;  %v531_v18 = vadd.f32 %v2229_v48, %v257_v51  ;;  %v532_v20 = vadd.f32 %v2233_v54, %v258_v17  ;;  %v533_v24 = vadd.f32 %v2237_v5, %v259_v49 }
  0xba   :  { %v727_v14 = vadd.f32 %v2101_v59, %v567_v30  ;;  %v728_v38 = vadd.f32 %v2101_v59, %v568_v37  ;;  %v729_v19 = vadd.f32 %v2101_v59, %v569_v1  ;;  %v730_v41 = vadd.f32 %v2101_v59, %v570_v8 }
  0xbb   :  { %v3444_v30 = vmax.f32 %v2194_v16, 0.0  ;;  %v3445_v1 = vmax.f32 %v2197_v22, 0.0  ;;  %v534_v52 = vadd.f32 %v2241_v7, %v260_v6  ;;  %v291_v48 = vmul.f32 %v2057_v29, %v2243_v9 }
  0xbc   :  { %v823_v2 = vmax.f32 %v727_v14, 0.0  ;;  %v824_v3 = vmax.f32 %v728_v38, 0.0  ;;  %v825_v34 = vmax.f32 %v729_v19, 0.0  ;;  %v826_v21 = vmax.f32 %v730_v41, 0.0 }
  0xbd   :  { %v2333_v40 = vpop.permute.xlu0 %160  ;;  %v867_v37 = vpack.c.bf16 %v3444_v30, %v807_v4  ;;  %v868_v45 = vpack.c.bf16 %v3445_v1, %v808_v27  ;;  %v2353_v7 = vadd.f32 %v2103_v60, %v531_v18  ;;  %v2359_v27 = vadd.f32 %v2103_v60, %v533_v24 }
  0xbe   :  { %v871_v54 = vpack.c.bf16 %v823_v2, %v817_v35  ;;  %v872_v8 = vpack.c.bf16 %v824_v3, %v818_v43  ;;  %v873_v5 = vpack.c.bf16 %v825_v34, %v819_v23  ;;  %v874_v51 = vpack.c.bf16 %v826_v21, %v820_v50  ;;  %v2361_v35 = vpop.permute.xlu2 %606 }
  0xbf   :  { %v269_v17 = vmul.f32 %v2091_v53, %v2333_v40  ;;  %v270_v49 = vmul.f32 %v2095_v56, %v2333_v40  ;;  %v271_v4 = vmul.f32 %v2097_v57, %v2333_v40  ;;  %v272_v16 = vmul.f32 %v2099_v58, %v2333_v40  ;;  %v2350_v22 = vpop.permute.xlu1 %614 }
  0xc0   :  { %941 = vmatpush.bf16.msra.mxu0 %v871_v54  ;;  %990 = vmatpush.bf16.msra.mxu1 %v872_v8  ;;  %v2356_v21 = vadd.f32 %v2103_v60, %v532_v20  ;;  %v697_v23 = vadd.f32 %v2350_v22, %v537_v28  ;;  %v698_v14 = vadd.f32 %v2350_v22, %v2291_v25 }
  0xc1   :  { %1039 = vmatpush.bf16.msra.mxu2 %v873_v5  ;;  %1088 = vmatpush.bf16.msra.mxu3 %v874_v51  ;;  %v543_v43 = vadd.f32 %v2213_v13, %v269_v17  ;;  %v544_v6 = vadd.f32 %v2217_v55, %v270_v49  ;;  %v545_v38 = vadd.f32 %v2221_v42, %v271_v4 }
  0xc2   :  { %v699_v19 = vadd.f32 %v2350_v22, %v2293_v26  ;;  %v546_v41 = vadd.f32 %v2225_v46, %v272_v16  ;;  %v793_v18 = vmax.f32 %v697_v23, 0.0  ;;  %v700_v13 = vadd.f32 %v2350_v22, %v2295_v36 }
  0xc3   :  { %v703_v50 = vadd.f32 %v2245_v10, %v543_v43  ;;  %v704_v20 = vadd.f32 %v2245_v10, %v544_v6  ;;  %v794_v55 = vmax.f32 %v698_v14, 0.0  ;;  %v705_v28 = vadd.f32 %v2245_v10, %v545_v38 }
  0xc4   :  { %942 = vmatpush.bf16.msra.mxu0 %v2300_v44  ;;  %991 = vmatpush.bf16.msra.mxu1 %v866_v47  ;;  %v795_v42 = vmax.f32 %v699_v19, 0.0  ;;  %v706_v25 = vadd.f32 %v2245_v10, %v546_v41  ;;  %v796_v2 = vmax.f32 %v700_v13, 0.0  ;;  %v2382_v3 = vadd.f32 %v2173_v11, %v291_v48 }
  0xc5   :  { %1040 = vmatpush.bf16.msra.mxu2 %v867_v37  ;;  %1089 = vmatpush.bf16.msra.mxu3 %v868_v45  ;;  %v2379_v46 = vpop.permute.xlu0 %145  ;;  %v799_v26 = vmax.f32 %v703_v50, 0.0  ;;  %v800_v24 = vmax.f32 %v704_v20, 0.0  ;;  %v801_v36 = vmax.f32 %v705_v28, 0.0  ;;  %v694_v49 = vadd.f32 %v2103_v60, %v534_v52  ;;  %v3448_v28 = vld [vmem:[#allocation20_spill] sm:$0xff] }
  0xc6   :  { %v802_v34 = vmax.f32 %v706_v25, 0.0  ;;  %v251_v44 = vmul.f32 %v2091_v53, %v2379_v46  ;;  %v252_v47 = vmul.f32 %v2095_v56, %v2379_v46  ;;  %v253_v45 = vmul.f32 %v2097_v57, %v2379_v46  ;;  %v2401_v43 = vpop.permute.xlu2 %130 }
  0xc7   :  { %v859_v30 = vpack.c.bf16 %v799_v26, %v793_v18  ;;  %v860_v1 = vpack.c.bf16 %v800_v24, %v794_v55  ;;  %v254_v37 = vmul.f32 %v2099_v58, %v2379_v46  ;;  %v861_v54 = vpack.c.bf16 %v801_v36, %v795_v42  ;;  %v3450_v24 = vld [vmem:[#allocation28_spill] sm:$0xff] }
  0xc8   :  { %v862_v8 = vpack.c.bf16 %v802_v34, %v796_v2  ;;  %v525_v11 = vadd.f32 %v2274_v12, %v251_v44  ;;  %v526_v48 = vadd.f32 %v2278_v31, %v252_v47  ;;  %v2394_v5 = vpop.permute.xlu1 %135  ;;  %v527_v51 = vadd.f32 %v2282_v33, %v253_v45  ;;  %v3451_v44 = vld [vmem:[#allocation24_spill] sm:$0xff] }
  0xc9   :  { %943 = vmatpush.bf16.msra.mxu0 %v859_v30  ;;  %992 = vmatpush.bf16.msra.mxu1 %v860_v1  ;;  %3446 = vst [vmem:[#allocation38_spill] sm:$0xff] %v2394_v5  ;;  %v528_v17 = vadd.f32 %v2286_v39, %v254_v37  ;;  %v787_v6 = vmax.f32 %v2353_v7, 0.0  ;;  %v788_v39 = vmax.f32 %v2356_v21, 0.0  ;;  %v789_v52 = vmax.f32 %v2359_v27, 0.0  ;;  %v3447_v21 = vld [vmem:[#allocation22_spill] sm:$0xff]  ;;  %v3449_v27 = vld [vmem:[#allocation25_spill] sm:$0xff] }
  0xca   :  { %1041 = vmatpush.bf16.msra.mxu2 %v861_v54  ;;  %1090 = vmatpush.bf16.msra.mxu3 %v862_v8  ;;  %v685_v4 = vadd.f32 %v2361_v35, %v525_v11  ;;  %v686_v16 = vadd.f32 %v2361_v35, %v526_v48  ;;  %v687_v31 = vadd.f32 %v2361_v35, %v527_v51  ;;  %v790_v19 = vmax.f32 %v694_v49, 0.0  ;;  %v3452_v1 = vld [vmem:[#allocation31_spill] sm:$0xff]  ;;  %v3453_v37 = vld [vmem:[#allocation34_spill] sm:$0xff]  ;;  %v3454_v8 = vld [vmem:[#allocation37_spill] sm:$0xff] }
  0xcb   :  { %v688_v12 = vadd.f32 %v2361_v35, %v528_v17  ;;  %v239_v7 = vmul.f32 %v2091_v53, %v2394_v5  ;;  %v475_v55 = vmul.f32 %v3447_v21, %v2061_v32  ;;  %v470_v42 = vmul.f32 %v3449_v27, %v3448_v28  ;;  %v3455_v51 = vld [vmem:[#allocation21_spill] sm:$0xff] }
  0xcc   :  { %v781_v23 = vmax.f32 %v685_v4, 0.0  ;;  %v782_v33 = vmax.f32 %v686_v16, 0.0  ;;  %v783_v14 = vmax.f32 %v687_v31, 0.0  ;;  %v476_v25 = vmul.f32 %v3449_v27, %v2061_v32 }
  0xcd   :  { %v784_v38 = vmax.f32 %v688_v12, 0.0  ;;  %v417_v2 = vmul.f32 %v2105_v61, %v3450_v24  ;;  %v418_v36 = vmul.f32 %v2107_v62, %v3450_v24  ;;  %v297_v34 = vmul.f32 %v2057_v29, %v2297_v15 }
  0xce   :  { %v853_v41 = vpack.c.bf16 %v787_v6, %v781_v23  ;;  %v854_v50 = vpack.c.bf16 %v788_v39, %v782_v33  ;;  %v855_v18 = vpack.c.bf16 %v789_v52, %v783_v14  ;;  %v2418_v26 = vpop.permute.xlu2 %320  ;;  %v292_v47 = vmul.f32 %v3451_v44, %v2243_v9  ;;  %v3456_v23 = vld [vmem:[#allocation19_spill] sm:$0xff] }
  0xcf   :  { %v856_v20 = vpack.c.bf16 %v790_v19, %v784_v38  ;;  %v419_v30 = vmul.f32 %v2109_v63, %v3450_v24  ;;  %v420_v32 = vmul.f32 %v2112_v0, %v3450_v24  ;;  %v815_v45 = vmax.f32 %v3452_v1, 0.0  ;;  %v3457_v14 = vld [vmem:[#allocation27_spill] sm:$0xff]  ;;  %v3459_v19 = vld [vmem:[#allocation29_spill] sm:$0xff]  ;;  %v3462_v1 = vld [vmem:[#allocation26_spill] sm:$0xff] }
  0xd0   :  { %944 = vmatpush.bf16.msra.mxu0 %v853_v41  ;;  %993 = vmatpush.bf16.msra.mxu1 %v854_v50  ;;  %v816_v54 = vmax.f32 %v3453_v37, 0.0  ;;  %v2436_v11 = vmul.f32 %v2091_v53, %v3454_v8  ;;  %v240_v48 = vmul.f32 %v2095_v56, %v2394_v5  ;;  %v2442_v9 = vmul.f32 %v2095_v56, %v3454_v8  ;;  %v3458_v52 = vld [vmem:[#allocation35_spill] sm:$0xff] }
  0xd1   :  { %1042 = vmatpush.bf16.msra.mxu2 %v855_v18  ;;  %1091 = vmatpush.bf16.msra.mxu3 %v856_v20  ;;  %v2408_v13 = vpop.permute.xlu1 %328  ;;  %v267_v17 = vmul.f32 %v2057_v29, %v3455_v51  ;;  %v513_v49 = vadd.f32 %v417_v2, %v239_v7  ;;  %v241_v4 = vmul.f32 %v2097_v57, %v2394_v5  ;;  %v3460_v18 = vld [vmem:[#allocation33_spill] sm:$0xff] }
  0xd2   :  { %v2450_v16 = vmul.f32 %v2097_v57, %v3454_v8  ;;  %v242_v31 = vmul.f32 %v2099_v58, %v2394_v5  ;;  %v571_v12 = vadd.f32 %v475_v55, %v297_v34  ;;  %v725_v6 = vadd.f32 %v3456_v23, %v2382_v3 }
  0xd3   :  { %v298_v33 = vmul.f32 %v3451_v44, %v2297_v15  ;;  %v566_v39 = vadd.f32 %v470_v42, %v292_v47  ;;  %v713_v38 = vadd.f32 %v3458_v52, %v3457_v14  ;;  %v714_v41 = vadd.f32 %v3458_v52, %v3459_v19  ;;  %v3461_v42 = vld [vmem:[#allocation32_spill] sm:$0xff] }
  0xd4   :  { %v273_v50 = vmul.f32 %v2057_v29, %v2333_v40  ;;  %v445_v20 = vmul.f32 %v3447_v21, %v3460_v18  ;;  %v514_v55 = vadd.f32 %v418_v36, %v240_v48  ;;  %v731_v3 = vadd.f32 %v2101_v59, %v571_v12 }
  0xd5   :  { %v572_v28 = vadd.f32 %v476_v25, %v298_v33  ;;  %v726_v15 = vadd.f32 %v3456_v23, %v566_v39  ;;  %v2471_v2 = vadd.f32 %v3461_v42, %v513_v49  ;;  %v515_v34 = vadd.f32 %v419_v30, %v241_v4 }
  0xd6   :  { %v516_v47 = vadd.f32 %v420_v32, %v242_v31  ;;  %v451_v37 = vmul.f32 %v3447_v21, %v3462_v1  ;;  %v821_v14 = vmax.f32 %v725_v6, 0.0  ;;  %v827_v52 = vmax.f32 %v731_v3, 0.0  ;;  %v2476_v25 = vpop.permute.xlu2 %115 }
  0xd7   :  { %v732_v19 = vadd.f32 %v2101_v59, %v572_v28  ;;  %v809_v24 = vmax.f32 %v713_v38, 0.0  ;;  %v822_v5 = vmax.f32 %v726_v15, 0.0  ;;  %v810_v36 = vmax.f32 %v714_v41, 0.0  ;;  %3463 = vst [vmem:[#allocation22_spill] sm:$0xff] %v2476_v25  ;;  %v3473_v15 = vld [vmem:[#allocation14_spill] sm:$0xff] }
  0xd8   :  { %v541_v48 = vadd.f32 %v445_v20, %v267_v17  ;;  %v547_v12 = vadd.f32 %v451_v37, %v273_v50  ;;  %v2478_v23 = vpack.c.bf16 %v827_v52, %v821_v14  ;;  %v274_v30 = vmul.f32 %v3451_v44, %v2333_v40  ;;  %v2525_v14 = vpop.permute.xlu0 %120 }
  0xd9   :  { %v828_v49 = vmax.f32 %v732_v19, 0.0  ;;  %v2480_v33 = vpack.c.bf16 %v815_v45, %v809_v24  ;;  %v2484_v32 = vpack.c.bf16 %v816_v54, %v810_v36  ;;  %v446_v17 = vmul.f32 %v3449_v27, %v3460_v18  ;;  %3470 = vst [vmem:[#allocation37_spill] sm:$0xff] %v2525_v14 }
  0xda   :  { %v2466_v7 = vpop.permute.xlu1 %125  ;;  %3464 = vst [vmem:[#allocation20_spill] sm:$0xff] %v2478_v23  ;;  %v701_v4 = vadd.f32 %v2350_v22, %v541_v48  ;;  %v707_v59 = vadd.f32 %v2245_v10, %v547_v12  ;;  %v2491_v31 = vadd.f32 %v3461_v42, %v514_v55  ;;  %v248_v6 = vmul.f32 %v2099_v58, %v3454_v8  ;;  %v3471_v48 = vld [vmem:[#allocation23_spill] sm:$0xff] }
  0xdb   :  { %3465 = vst [vmem:[#allocation25_spill] sm:$0xff] %v2480_v33  ;;  %v233_v24 = vmul.f32 %v2091_v53, %v2401_v43  ;;  %v268_v40 = vmul.f32 %v3451_v44, %v3455_v51  ;;  %v2499_v45 = vpack.c.bf16 %v828_v49, %v822_v5  ;;  %v452_v38 = vmul.f32 %v3449_v27, %v3462_v1  ;;  %v3469_v1 = vld [vmem:[#allocation36_spill] sm:$0xff] }
  0xdc   :  { %3466 = vst [vmem:[#allocation24_spill] sm:$0xff] %v2484_v32  ;;  %v797_v54 = vmax.f32 %v701_v4, 0.0  ;;  %v803_v39 = vmax.f32 %v707_v59, 0.0  ;;  %v2505_v50 = vadd.f32 %v3461_v42, %v515_v34  ;;  %v2508_v18 = vadd.f32 %v3461_v42, %v516_v47 }
  0xdd   :  { %3467 = vst [vmem:[#allocation31_spill] sm:$0xff] %v2499_v45  ;;  %v411_v20 = vmul.f32 %v2105_v61, %v2418_v26  ;;  %v234_v5 = vmul.f32 %v2095_v56, %v2401_v43  ;;  %v542_v3 = vadd.f32 %v446_v17, %v268_v40  ;;  %v548_v28 = vadd.f32 %v452_v38, %v274_v30 }
  0xde   :  { %v2516_v51 = vpack.c.bf16 %v803_v39, %v797_v54  ;;  %v412_v34 = vmul.f32 %v2107_v62, %v2418_v26  ;;  %v235_v47 = vmul.f32 %v2097_v57, %v2401_v43  ;;  %v261_v37 = vmul.f32 %v2057_v29, %v3469_v1 }
  0xdf   :  { %v413_v52 = vmul.f32 %v2109_v63, %v2418_v26  ;;  %v702_v19 = vadd.f32 %v2350_v22, %v542_v3  ;;  %v708_v36 = vadd.f32 %v2245_v10, %v548_v28  ;;  %v439_v12 = vmul.f32 %v3447_v21, %v3471_v48  ;;  %v2545_v40 = vpop.permute.xlu2 %312 }
  0xe0   :  { %3468 = vst [vmem:[#allocation34_spill] sm:$0xff] %v2516_v51  ;;  %v423_v49 = vmul.f32 %v2105_v61, %v2408_v13  ;;  %v771_v30 = vmax.f32 %v2505_v50, 0.0  ;;  %v772_v4 = vmax.f32 %v2508_v18, 0.0  ;;  %v2537_v59 = vadd.f32 %v411_v20, %v233_v24 }
  0xe1   :  { %v424_v17 = vmul.f32 %v2107_v62, %v2408_v13  ;;  %v425_v22 = vmul.f32 %v2109_v63, %v2408_v13  ;;  %v426_v10 = vmul.f32 %v2112_v0, %v2408_v13  ;;  %3472 = vst [vmem:[#allocation21_spill] sm:$0xff] %v2545_v40  ;;  %v1926_v54 = vmov 67  }
  0xe2   :  { %1762 = vset.pattern.permute.xlu1 %v1926_v54  ;;  %1761 = vset.pattern.permute.xlu0 %v1926_v54  ;;  %v798_v39 = vmax.f32 %v702_v19, 0.0  ;;  %v804_v38 = vmax.f32 %v708_v36, 0.0  ;;  %v255_v24 = vmul.f32 %v2057_v29, %v2379_v46  ;;  %v535_v50 = vadd.f32 %v439_v12, %v261_v37  ;;  %v3474_v19 = vld [vmem:[#allocation12_spill] sm:$0xff] }
  0xe3   :  { %v2512_v55 = vpop.permute.xlu1 %316  ;;  %v2549_v18 = vadd.f32 %v412_v34, %v234_v5  ;;  %v2551_v20 = vadd.f32 %v413_v52, %v235_v47  ;;  %v236_v3 = vmul.f32 %v2099_v58, %v2401_v43  ;;  %v414_v28 = vmul.f32 %v2112_v0, %v2418_v26  ;;  %938 = vperm.xlu1 %1762, %v3473_v15   ;;  %v3475_v5 = vld [vmem:[#allocation30_spill] sm:$0xff] }
  0xe4   :  { %v519_v41 = vadd.f32 %v423_v49, %v2436_v11  ;;  %934 = vperm.xlu0 %1761, %v3474_v19   ;;  %v2562_v36 = vmul.f32 %v2091_v53, %v2525_v14  ;;  %v433_v34 = vmul.f32 %v3447_v21, %v3475_v5  ;;  %v256_v47 = vmul.f32 %v3451_v44, %v2379_v46  ;;  %v3477_v46 = vld [vmem:[#allocation13_spill] sm:$0xff] }
  0xe5   :  { %v520_v37 = vadd.f32 %v424_v17, %v2442_v9  ;;  %v521_v52 = vadd.f32 %v425_v22, %v2450_v16  ;;  %v522_v12 = vadd.f32 %v426_v10, %v248_v6  ;;  %v262_v11 = vmul.f32 %v3451_v44, %v3469_v1  ;;  %1763 = vset.pattern.permute.xlu2 %v1926_v54 }
  0xe6   :  { %v2574_v49 = vpack.c.bf16 %v804_v38, %v798_v39  ;;  %v529_v19 = vadd.f32 %v433_v34, %v255_v24  ;;  %v695_v51 = vadd.f32 %v2103_v60, %v535_v50  ;;  %v434_v32 = vmul.f32 %v3449_v27, %v3475_v5  ;;  %926 = vperm.xlu2 %1763, %v3477_v46   ;;  %v2587_v39 = vpop.permute.xlu0 %105 }
  0xe7   :  { %v510_v17 = vadd.f32 %v414_v28, %v236_v3  ;;  %v440_v10 = vmul.f32 %v3449_v27, %v3471_v48  ;;  %3478 = vst [vmem:[#allocation27_spill] sm:$0xff] %v2587_v39  ;;  %v3480_v28 = vmax.f32 %v2491_v31, 0.0  ;;  %v2606_v31 = vmul.f32 %v2091_v53, %v2587_v39 }
  0xe8   :  { %3476 = vst [vmem:[#allocation19_spill] sm:$0xff] %v2574_v49  ;;  %v689_v22 = vadd.f32 %v2361_v35, %v529_v19  ;;  %v530_v54 = vadd.f32 %v434_v32, %v256_v47  ;;  %v791_v34 = vmax.f32 %v695_v51, 0.0  ;;  %v3481_v32 = vld [vmem:[#allocation15_spill] sm:$0xff]  ;;  %v2595_v47 = vpop.permute.xlu2 %594  ;;  %v222_v51 = vmul.f32 %v2095_v56, %v2525_v14 }
  0xeb   :  { %930 = vperm.xlu1 %1762, %v3481_v32   ;;  %v408_v32 = vmul.f32 %v2112_v0, %v2512_v55 }
  0xec   :  { %v2572_v15 = vpop.permute.xlu1 %602 }
  0xed   :  { %v679_v9 = vadd.f32 %v2572_v15, %v519_v41  ;;  %v680_v16 = vadd.f32 %v2572_v15, %v520_v37  ;;  %v681_v6 = vadd.f32 %v2572_v15, %v521_v52  ;;  %v682_v1 = vadd.f32 %v2572_v15, %v522_v12 }
  0xee   :  { %v785_v41 = vmax.f32 %v689_v22, 0.0  ;;  %v536_v37 = vadd.f32 %v440_v10, %v262_v11  ;;  %v690_v52 = vadd.f32 %v2361_v35, %v530_v54  ;;  %v3479_v12 = vmax.f32 %v2471_v2, 0.0 }
  0xef   :  { %v775_v38 = vmax.f32 %v679_v9, 0.0  ;;  %v776_v24 = vmax.f32 %v680_v16, 0.0  ;;  %v777_v50 = vmax.f32 %v681_v6, 0.0  ;;  %v778_v5 = vmax.f32 %v682_v1, 0.0  ;;  %v3482_v9 = vld [vmem:[#allocation17_spill] sm:$0xff] }
  0xf0   :  { %922 = vperm.xlu0 %1761, %v3482_v9   ;;  %v223_v35 = vmul.f32 %v2097_v57, %v2525_v14  ;;  %v224_v2 = vmul.f32 %v2099_v58, %v2525_v14  ;;  %v696_v11 = vadd.f32 %v2103_v60, %v536_v37  ;;  %v786_v16 = vmax.f32 %v690_v52, 0.0 }
  0xf1   :  { %v847_v3 = vpack.c.bf16 %v775_v38, %v3479_v12  ;;  %v848_v19 = vpack.c.bf16 %v776_v24, %v3480_v28  ;;  %v849_v46 = vpack.c.bf16 %v777_v50, %v771_v30  ;;  %v850_v48 = vpack.c.bf16 %v778_v5, %v772_v4  ;;  %v3485_v50 = vld [vmem:[#allocation16_spill] sm:$0xff]  ;;  %v2690_v33 = vpop.permute.xlu2 %300 }
  0xf2   :  { %v2610_v30 = vmul.f32 %v2095_v56, %v2587_v39  ;;  %v2612_v4 = vpack.c.bf16 %v791_v34, %v785_v41  ;;  %v2617_v6 = vmul.f32 %v2091_v53, %v2476_v25  ;;  %v2621_v1 = vmul.f32 %v2097_v57, %v2587_v39  ;;  %918 = vperm.xlu2 %1763, %v3485_v50   ;;  %v2674_v50 = vpop.permute.xlu0 %304 }
  0xf3   :  { %945 = vmatpush.bf16.msra.mxu0 %v847_v3  ;;  %994 = vmatpush.bf16.msra.mxu1 %v848_v19  ;;  %v2625_v22 = vmul.f32 %v2099_v58, %v2587_v39  ;;  %v2631_v60 = vmul.f32 %v2095_v56, %v2476_v25  ;;  %v2635_v54 = vmul.f32 %v2097_v57, %v2476_v25  ;;  %v792_v24 = vmax.f32 %v696_v11, 0.0  ;;  %v3488_v39 = vld [vmem:[#allocation18_spill] sm:$0xff] }
  0xf4   :  { %3483 = vst [vmem:[#allocation35_spill] sm:$0xff] %v2612_v4  ;;  %1043 = vmatpush.bf16.msra.mxu2 %v849_v46  ;;  %1092 = vmatpush.bf16.msra.mxu3 %v850_v48  ;;  %v2639_v38 = vmul.f32 %v2099_v58, %v2476_v25  ;;  %v399_v5 = vmul.f32 %v2105_v61, %v2545_v40 }
  0xf5   :  { %3484 = vst [vmem:[#allocation29_spill] sm:$0xff] %v2625_v22  ;;  %v2627_v10 = vpop.permute.xlu1 %308  ;;  %v400_v41 = vmul.f32 %v2107_v62, %v2545_v40  ;;  %v401_v34 = vmul.f32 %v2109_v63, %v2545_v40  ;;  %v402_v37 = vmul.f32 %v2112_v0, %v2545_v40  ;;  %v405_v52 = vmul.f32 %v2105_v61, %v2512_v55 }
  0xf6   :  { %v406_v12 = vmul.f32 %v2107_v62, %v2512_v55  ;;  %v407_v3 = vmul.f32 %v2109_v63, %v2512_v55  ;;  %v2656_v28 = vpack.c.bf16 %v792_v24, %v786_v16  ;;  %v227_v19 = vmul.f32 %v2091_v53, %v2466_v7  ;;  %3487 = vst [vmem:[#allocation32_spill] sm:$0xff] %v2674_v50 }
  0xf7   :  { %v228_v46 = vmul.f32 %v2095_v56, %v2466_v7  ;;  %v229_v48 = vmul.f32 %v2097_v57, %v2466_v7  ;;  %v667_v9 = vadd.f32 %v2595_v47, %v2537_v59  ;;  %v668_v11 = vadd.f32 %v2595_v47, %v2549_v18  ;;  %910 = vperm.xlu1 %1762, %v3488_v39   ;;  %v2685_v18 = vld [vmem:[#allocation7 + $0x30] sm:$0xff] }
  0xf8   :  { %3486 = vst [vmem:[#allocation33_spill] sm:$0xff] %v2656_v28  ;;  %v669_v16 = vadd.f32 %v2595_v47, %v2551_v20  ;;  %v230_v24 = vmul.f32 %v2099_v58, %v2466_v7  ;;  %v670_v28 = vadd.f32 %v2595_v47, %v510_v17  ;;  %v2679_v4 = vadd.f32 %v399_v5, %v2562_v36 }
  0xf9   :  { %v2681_v40 = vadd.f32 %v400_v41, %v222_v51  ;;  %v2683_v59 = vadd.f32 %v401_v34, %v223_v35  ;;  %3489 = vst [vmem:[#allocation26_spill] sm:$0xff] %v2685_v18  ;;  %902 = vperm.xlu0 %1761, %v2685_v18   ;;  %v501_v20 = vadd.f32 %v405_v52, %v227_v19  ;;  %v763_v35 = vmax.f32 %v667_v9, 0.0  ;;  %v2708_v34 = vld [vmem:[#allocation7 + $0x48] sm:$0xff] }
  0xfa   :  { %v502_v14 = vadd.f32 %v406_v12, %v228_v46  ;;  %v503_v25 = vadd.f32 %v407_v3, %v229_v48  ;;  %v2688_v49 = vadd.f32 %v402_v37, %v224_v2  ;;  %v504_v39 = vadd.f32 %v408_v32, %v230_v24  ;;  %3490 = vst [vmem:[#allocation36_spill] sm:$0xff] %v2708_v34  ;;  %v3491_v12 = vld [vmem:[#allocation38_spill] sm:$0xff] }
  0xfb   :  { %v2694_v36 = vmul.f32 %v2105_v61, %v2674_v50  ;;  %v2698_v17 = vmul.f32 %v2107_v62, %v2674_v50  ;;  %v2702_v51 = vmul.f32 %v2109_v63, %v2674_v50  ;;  %v764_v5 = vmax.f32 %v668_v11, 0.0  ;;  %914 = vperm.xlu2 %1763, %v2708_v34  }
  0xfc   :  { %v765_v41 = vmax.f32 %v669_v16, 0.0  ;;  %v2706_v2 = vmul.f32 %v2112_v0, %v2674_v50  ;;  %v766_v52 = vmax.f32 %v670_v28, 0.0  ;;  %v243_v3 = vmul.f32 %v2057_v29, %v3491_v12 }
  0xfd   :  { %v237_v19 = vmul.f32 %v2057_v29, %v2401_v43  ;;  %v415_v46 = vmul.f32 %v3447_v21, %v2418_v26  ;;  %v381_v28 = vmul.f32 %v2105_v61, %v2690_v33  ;;  %v238_v24 = vmul.f32 %v3451_v44, %v2401_v43  ;;  %v3494_v43 = vld [vmem:[#allocation28_spill] sm:$0xff] }
  0xfe   :  { %v2711_v37 = vpop.permute.xlu1 %590  ;;  %v416_v34 = vmul.f32 %v3449_v27, %v2418_v26  ;;  %v244_v26 = vmul.f32 %v3451_v44, %v3491_v12  ;;  %v422_v22 = vmul.f32 %v3449_v27, %v3494_v43 }
  0xff   :  { %v661_v48 = vadd.f32 %v2711_v37, %v501_v20  ;;  %v662_v32 = vadd.f32 %v2711_v37, %v502_v14  ;;  %v663_v9 = vadd.f32 %v2711_v37, %v503_v25  ;;  %v664_v11 = vadd.f32 %v2711_v37, %v504_v39  ;;  %v2731_v14 = vld [vmem:[#allocation7 + $0x38] sm:$0xff]  ;;  %v2738_v39 = vld [vmem:[#allocation7 + $0x28] sm:$0xff] }
 0x100   :  { %v2725_v16 = vadd.f32 %v415_v46, %v237_v19  ;;  %3492 = vst [vmem:[#allocation23_spill] sm:$0xff] %v2731_v14  ;;  %906 = vperm.xlu1 %1762, %v2731_v14   ;;  %v2736_v25 = vmul.f32 %v2107_v62, %v2690_v33  ;;  %v421_v19 = vmul.f32 %v3447_v21, %v3494_v43  ;;  %v2793_v43 = vld [vmem:[#allocation7 + $0x10] sm:$0xff] }
 0x101   :  { %v757_v18 = vmax.f32 %v661_v48, 0.0  ;;  %v758_v50 = vmax.f32 %v662_v32, 0.0  ;;  %v759_v20 = vmax.f32 %v663_v9, 0.0  ;;  %v760_v45 = vmax.f32 %v664_v11, 0.0  ;;  %3493 = vst [vmem:[#allocation14_spill] sm:$0xff] %v2738_v39  ;;  %898 = vperm.xlu0 %1761, %v2738_v39  }
 0x102   :  { %v2745_v46 = vadd.f32 %v416_v34, %v238_v24  ;;  %v427_v14 = vmul.f32 %v3447_v21, %v2408_v13  ;;  %v517_v23 = vadd.f32 %v421_v19, %v243_v3  ;;  %v231_v39 = vmul.f32 %v2057_v29, %v2466_v7  ;;  %v2775_v24 = vld [vmem:[#allocation7 + $0x20] sm:$0xff] }
 0x103   :  { %v841_v48 = vpack.c.bf16 %v763_v35, %v757_v18  ;;  %v842_v32 = vpack.c.bf16 %v764_v5, %v758_v50  ;;  %v843_v9 = vpack.c.bf16 %v765_v41, %v759_v20  ;;  %v844_v11 = vpack.c.bf16 %v766_v52, %v760_v45  ;;  %v2759_v18 = vpop.permute.xlu2 %586  ;;  %894 = vperm.xlu2 %1763, %v2775_v24  }
 0x104   :  { %v409_v34 = vmul.f32 %v3447_v21, %v2512_v55  ;;  %v232_v50 = vmul.f32 %v3451_v44, %v2466_v7  ;;  %v410_v45 = vmul.f32 %v3449_v27, %v2512_v55  ;;  %v393_v35 = vmul.f32 %v2105_v61, %v2627_v10 }
 0x105   :  { %946 = vmatpush.bf16.msra.mxu0 %v841_v48  ;;  %995 = vmatpush.bf16.msra.mxu1 %v842_v32  ;;  %v394_v5 = vmul.f32 %v2107_v62, %v2627_v10  ;;  %v249_v41 = vmul.f32 %v2057_v29, %v3454_v8  ;;  %v395_v7 = vmul.f32 %v2109_v63, %v2627_v10  ;;  %v2805_v48 = vld [vmem:[#allocation7] sm:$0xff] }
 0x106   :  { %1044 = vmatpush.bf16.msra.mxu2 %v843_v9  ;;  %1093 = vmatpush.bf16.msra.mxu3 %v844_v11  ;;  %v518_v12 = vadd.f32 %v422_v22, %v244_v26  ;;  %v2771_v55 = vadd.f32 %v409_v34, %v231_v39  ;;  %v2773_v3 = vadd.f32 %v410_v45, %v232_v50 }
 0x107   :  { %v2767_v52 = vpop.permute.xlu1 %110  ;;  %v396_v61 = vmul.f32 %v2112_v0, %v2627_v10  ;;  %v2781_v62 = vadd.f32 %v381_v28, %v2606_v31  ;;  %v2785_v20 = vmul.f32 %v2109_v63, %v2690_v33  ;;  %v2789_v22 = vmul.f32 %v2112_v0, %v2690_v33 }
 0x108   :  { %v655_v39 = vadd.f32 %v2759_v18, %v2679_v4  ;;  %886 = vperm.xlu1 %1762, %v2793_v43   ;;  %v523_v19 = vadd.f32 %v427_v14, %v249_v41  ;;  %v677_v26 = vadd.f32 %v3461_v42, %v517_v23  ;;  %v428_v31 = vmul.f32 %v3449_v27, %v2408_v13 }
 0x109   :  { %v489_v63 = vadd.f32 %v393_v35, %v2617_v6  ;;  %v490_v28 = vadd.f32 %v394_v5, %v2631_v60  ;;  %v656_v0 = vadd.f32 %v2759_v18, %v2681_v40  ;;  %v657_v4 = vadd.f32 %v2759_v18, %v2683_v59  ;;  %878 = vperm.xlu0 %1761, %v2805_v48   ;;  %v2827_v35 = vld [vmem:[#allocation7 + $0x18] sm:$0xff] }
 0x10a   :  { %v491_v14 = vadd.f32 %v395_v7, %v2635_v54  ;;  %v658_v23 = vadd.f32 %v2759_v18, %v2688_v49  ;;  %v250_v13 = vmul.f32 %v3451_v44, %v3454_v8  ;;  %v678_v6 = vadd.f32 %v3461_v42, %v518_v12 }
 0x10b   :  { %v492_v60 = vadd.f32 %v396_v61, %v2639_v38  ;;  %v209_v40 = vmul.f32 %v2091_v53, %v2767_v52  ;;  %v210_v59 = vmul.f32 %v2095_v56, %v2767_v52  ;;  %v211_v32 = vmul.f32 %v2097_v57, %v2767_v52  ;;  %890 = vperm.xlu2 %1763, %v2827_v35   ;;  %v2837_v7 = vpop.permute.xlu2 %578 }
 0x10c   :  { %v751_v54 = vmax.f32 %v655_v39, 0.0  ;;  %v683_v9 = vadd.f32 %v2572_v15, %v523_v19  ;;  %v773_v49 = vmax.f32 %v677_v26, 0.0  ;;  %v524_v11 = vadd.f32 %v428_v31, %v250_v13  ;;  %v1808_v19 = vld [vmem:[#allocation7 + $0x8] sm:$0xff] }
 0x10d   :  { %v752_v34 = vmax.f32 %v656_v0, 0.0  ;;  %v753_v8 = vmax.f32 %v657_v4, 0.0  ;;  %v212_v42 = vmul.f32 %v2099_v58, %v2767_v52  ;;  %v671_v38 = vadd.f32 %v2595_v47, %v2725_v16 }
 0x10e   :  { %v754_v53 = vmax.f32 %v658_v23, 0.0  ;;  %v779_v50 = vmax.f32 %v683_v9, 0.0  ;;  %v684_v56 = vadd.f32 %v2572_v15, %v524_v11  ;;  %v774_v45 = vmax.f32 %v678_v6, 0.0 }
 0x10f   :  { %v483_v5 = vadd.f32 %v2694_v36, %v209_v40  ;;  %v484_v41 = vadd.f32 %v2698_v17, %v210_v59  ;;  %v485_v58 = vadd.f32 %v2702_v51, %v211_v32  ;;  %v672_v16 = vadd.f32 %v2595_v47, %v2745_v46 }
 0x110   :  { %v2830_v57 = vpop.permute.xlu1 %582  ;;  %882 = vperm.xlu1 %1762, %v1808_v19   ;;  %v486_v36 = vadd.f32 %v2706_v2, %v212_v42  ;;  %v2844_v17 = vpack.c.bf16 %v779_v50, %v773_v49  ;;  %v780_v51 = vmax.f32 %v684_v56, 0.0  ;;  %v767_v26 = vmax.f32 %v671_v38, 0.0 }
 0x111   :  { %v649_v15 = vadd.f32 %v2830_v57, %v489_v63  ;;  %v650_v12 = vadd.f32 %v2830_v57, %v490_v28  ;;  %v651_v61 = vadd.f32 %v2830_v57, %v491_v14  ;;  %v652_v39 = vadd.f32 %v2830_v57, %v492_v60 }
 0x112   :  { %v643_v63 = vadd.f32 %v2837_v7, %v483_v5  ;;  %v644_v28 = vadd.f32 %v2837_v7, %v484_v41  ;;  %v2848_v4 = vpack.c.bf16 %v780_v51, %v774_v45  ;;  %v665_v14 = vadd.f32 %v2711_v37, %v2771_v55  ;;  %v3500_v51 = vld [vmem:[#allocation34_spill] sm:$0xff] }
 0x113   :  { %v745_v31 = vmax.f32 %v649_v15, 0.0  ;;  %v746_v47 = vmax.f32 %v650_v12, 0.0  ;;  %v747_v46 = vmax.f32 %v651_v61, 0.0  ;;  %v748_v0 = vmax.f32 %v652_v39, 0.0  ;;  %v3496_v12 = vld [vmem:[#allocation20_spill] sm:$0xff]  ;;  %v3497_v61 = vld [vmem:[#allocation31_spill] sm:$0xff] }
 0x114   :  { %v645_v60 = vadd.f32 %v2837_v7, %v485_v58  ;;  %v646_v40 = vadd.f32 %v2837_v7, %v486_v36  ;;  %v761_v59 = vmax.f32 %v665_v14, 0.0  ;;  %v666_v32 = vadd.f32 %v2711_v37, %v2773_v3  ;;  %v3498_v39 = vld [vmem:[#allocation25_spill] sm:$0xff] }
 0x115   :  { %v835_v23 = vpack.c.bf16 %v751_v54, %v745_v31  ;;  %v836_v13 = vpack.c.bf16 %v752_v34, %v746_v47  ;;  %v837_v2 = vpack.c.bf16 %v753_v8, %v747_v46  ;;  %v838_v6 = vpack.c.bf16 %v754_v53, %v748_v0  ;;  %v3495_v54 = vld [vmem:[#allocation29_spill] sm:$0xff]  ;;  %v3502_v31 = vld [vmem:[#allocation22_spill] sm:$0xff] }
 0x116   :  { %v478_v9 = vadd.f32 %v2736_v25, %v2610_v30  ;;  %v479_v55 = vadd.f32 %v2785_v20, %v2621_v1  ;;  %v480_v49 = vadd.f32 %v2789_v22, %v3495_v54  ;;  %v739_v34 = vmax.f32 %v643_v63, 0.0  ;;  %v3503_v46 = vld [vmem:[#allocation37_spill] sm:$0xff] }
 0x117   :  { %947 = vmatpush.bf16.msra.mxu0 %v835_v23  ;;  %996 = vmatpush.bf16.msra.mxu1 %v836_v13  ;;  %v2864_v8 = vpack.c.bf16 %v767_v26, %v761_v59  ;;  %v762_v42 = vmax.f32 %v666_v32, 0.0  ;;  %v768_v37 = vmax.f32 %v672_v16, 0.0  ;;  %v740_v20 = vmax.f32 %v644_v28, 0.0  ;;  %v3501_v26 = vld [vmem:[#allocation19_spill] sm:$0xff]  ;;  %v3504_v63 = vld [vmem:[#allocation21_spill] sm:$0xff] }
 0x118   :  { %1045 = vmatpush.bf16.msra.mxu2 %v837_v2  ;;  %1094 = vmatpush.bf16.msra.mxu3 %v838_v6  ;;  %v2862_v11 = vpop.permute.xlu1 %574  ;;  %v741_v22 = vmax.f32 %v645_v60, 0.0  ;;  %v742_v38 = vmax.f32 %v646_v40, 0.0  ;;  %v398_v36 = vmul.f32 %v3449_v27, %v2627_v10  ;;  %v219_v47 = vmul.f32 %v2057_v29, %v3502_v31  ;;  %v3505_v59 = vld [vmem:[#allocation35_spill] sm:$0xff]  ;;  %v3506_v32 = vld [vmem:[#allocation33_spill] sm:$0xff] }
 0x119   :  { %v637_v3 = vadd.f32 %v2862_v11, %v2781_v62  ;;  %v638_v30 = vadd.f32 %v2862_v11, %v478_v9  ;;  %v639_v25 = vadd.f32 %v2862_v11, %v479_v55  ;;  %v640_v1 = vadd.f32 %v2862_v11, %v480_v49  ;;  %v3507_v9 = vld [vmem:[#allocation32_spill] sm:$0xff] }
 0x11a   :  { %v2871_v53 = vpack.c.bf16 %v768_v37, %v762_v42  ;;  %v2874_v62 = vpack.c.bf16 %v1808_v19, %v2805_v48  ;;  %v3499_v48 = vld [vmem:[#allocation24_spill] sm:$0xff]  ;;  %v397_v19 = vmul.f32 %v3447_v21, %v2627_v10  ;;  %v225_v0 = vmul.f32 %v2057_v29, %v3503_v46  ;;  %v3508_v37 = vld [vmem:[#allocation27_spill] sm:$0xff] }
 0x11b   :  { %v733_v50 = vmax.f32 %v637_v3, 0.0  ;;  %v734_v56 = vmax.f32 %v638_v30, 0.0  ;;  %v735_v45 = vmax.f32 %v639_v25, 0.0  ;;  %v736_v5 = vmax.f32 %v640_v1, 0.0 }
 0x11c   :  { %v403_v28 = vmul.f32 %v3447_v21, %v3504_v63  ;;  %v220_v14 = vmul.f32 %v3451_v44, %v3502_v31  ;;  %v226_v23 = vmul.f32 %v3451_v44, %v3503_v46  ;;  %v404_v10 = vmul.f32 %v3449_v27, %v3504_v63  ;;  %v1813_v31 = vld [vmem:[#allocation7 + $0x68] sm:$0xff] }
 0x11d   :  { %v829_v41 = vpack.c.bf16 %v739_v34, %v733_v50  ;;  %v830_v58 = vpack.c.bf16 %v740_v20, %v734_v56  ;;  %v831_v16 = vpack.c.bf16 %v741_v22, %v735_v45  ;;  %v832_v15 = vpack.c.bf16 %v742_v38, %v736_v5 }
 0x11e   :  { %v385_v13 = vmul.f32 %v3447_v21, %v2690_v33  ;;  %v493_v2 = vadd.f32 %v397_v19, %v219_v47  ;;  %v494_v6 = vadd.f32 %v398_v36, %v220_v14  ;;  %v213_v60 = vmul.f32 %v2057_v29, %v2767_v52  ;;  %v1811_v19 = vld [vmem:[#allocation7 + $0x58] sm:$0xff] }
 0x11f   :  { %948 = vmatpush.bf16.msra.mxu0 %v829_v41  ;;  %997 = vmatpush.bf16.msra.mxu1 %v830_v58  ;;  %v386_v40 = vmul.f32 %v3449_v27, %v2690_v33  ;;  %v391_v55 = vmul.f32 %v3447_v21, %v3507_v9  ;;  %v214_v54 = vmul.f32 %v3451_v44, %v2767_v52  ;;  %v1815_v14 = vld [vmem:[#allocation7 + $0x78] sm:$0xff] }
 0x120   :  { %1046 = vmatpush.bf16.msra.mxu2 %v831_v16  ;;  %1095 = vmatpush.bf16.msra.mxu3 %v832_v15  ;;  %v392_v49 = vmul.f32 %v3449_v27, %v3507_v9  ;;  %v2918_v34 = vpack.c.bf16 %v2827_v35, %v2793_v43  ;;  %v499_v42 = vadd.f32 %v403_v28, %v225_v0  ;;  %v3511_v15 = vld [vmem:[#allocation23_spill] sm:$0xff]  ;;  %v1814_v28 = vld [vmem:[#allocation7 + $0x70] sm:$0xff] }
 0x121   :  { %v207_v33 = vmul.f32 %v2057_v29, %v3508_v37  ;;  %v208_v3 = vmul.f32 %v3451_v44, %v3508_v37  ;;  %v653_v30 = vadd.f32 %v2830_v57, %v493_v2  ;;  %v500_v21 = vadd.f32 %v404_v10, %v226_v23 }
 0x122   :  { %949 = vmatmul.bf16.vlgmr.msra.gmra.mxu0 %v2874_v62  ;;  %998 = vmatmul.bf16.vlgmr.msra.gmra.mxu1 %v2874_v62  ;;  %v654_v25 = vadd.f32 %v2830_v57, %v494_v6  ;;  %v659_v52 = vadd.f32 %v2759_v18, %v499_v42  ;;  %v487_v35 = vadd.f32 %v391_v55, %v213_v60 }
 0x123   :  { %1137 = vmatpush.bf16.msrb.mxu0 %v3496_v12  ;;  %1186 = vmatpush.bf16.msrb.mxu1 %v3497_v61  ;;  %v481_v1 = vadd.f32 %v385_v13, %v207_v33  ;;  %v482_v27 = vadd.f32 %v386_v40, %v208_v3  ;;  %v660_v43 = vadd.f32 %v2759_v18, %v500_v21  ;;  %v749_v44 = vmax.f32 %v653_v30, 0.0  ;;  %v3512_v61 = vld [vmem:[#allocation36_spill] sm:$0xff] }
 0x124   :  { %1047 = vmatmul.bf16.vlgmr.msra.gmra.mxu2 %v2874_v62  ;;  %1096 = vmatmul.bf16.vlgmr.msra.gmra.mxu3 %v2874_v62  ;;  %v488_v29 = vadd.f32 %v392_v49, %v214_v54  ;;  %v750_v57 = vmax.f32 %v654_v25, 0.0  ;;  %v755_v18 = vmax.f32 %v659_v52, 0.0  ;;  %v647_v22 = vadd.f32 %v2837_v7, %v487_v35 }
 0x125   :  { %v641_v20 = vadd.f32 %v2862_v11, %v481_v1  ;;  %v2983_v23 = vpack.c.bf16 %v1815_v14, %v1814_v28 }
 0x126   :  { %v648_v38 = vadd.f32 %v2837_v7, %v488_v29  ;;  %v839_v50 = vpack.c.bf16 %v755_v18, %v749_v44  ;;  %v743_v41 = vmax.f32 %v647_v22, 0.0  ;;  %v3510_v7 = vld [vmem:[#allocation26_spill] sm:$0xff] }
 0x127   :  { %1138 = vmatpush.bf16.msrb.mxu0 %v3498_v39  ;;  %1187 = vmatpush.bf16.msrb.mxu1 %v3499_v48  ;;  %v737_v45 = vmax.f32 %v641_v20, 0.0  ;;  %v2950_v12 = vpack.c.bf16 %v3511_v15, %v3510_v7  ;;  %v1810_v48 = vld [vmem:[#allocation7 + $0x50] sm:$0xff] }
 0x128   :  { %v744_v58 = vmax.f32 %v648_v38, 0.0  ;;  %v2963_v36 = vpack.c.bf16 %v1811_v19, %v1810_v48 }
 0x129   :  { %v833_v16 = vpack.c.bf16 %v743_v41, %v737_v45 }
 0x12b   :  { %1139 = vmatpush.bf16.msrb.mxu0 %v3500_v51  ;;  %1188 = vmatpush.bf16.msrb.mxu1 %v3501_v26  ;;  %v1812_v26 = vld [vmem:[#allocation7 + $0x60] sm:$0xff] }
 0x12c   :  { %v2971_v47 = vpack.c.bf16 %v1813_v31, %v1812_v26 }
 0x12f   :  { %1140 = vmatpush.bf16.msrb.mxu0 %v3505_v59  ;;  %1189 = vmatpush.bf16.msrb.mxu1 %v3506_v32 }
 0x132   :  { %954 = vmatmul.bf16.gmra.mxu0 %v2918_v34  ;;  %1003 = vmatmul.bf16.gmra.mxu1 %v2918_v34 }
 0x133   :  { %1141 = vmatpush.bf16.msrb.mxu0 %v2844_v17  ;;  %1190 = vmatpush.bf16.msrb.mxu1 %v2848_v4  ;;  %v642_v17 = vadd.f32 %v2862_v11, %v482_v27  ;;  %v756_v4 = vmax.f32 %v660_v43, 0.0 }
 0x134   :  { %1052 = vmatmul.bf16.gmra.mxu2 %v2918_v34  ;;  %1101 = vmatmul.bf16.gmra.mxu3 %v2918_v34 }
 0x135   :  { %v840_v56 = vpack.c.bf16 %v756_v4, %v750_v57  ;;  %v738_v5 = vmax.f32 %v642_v17, 0.0 }
 0x137   :  { %1142 = vmatpush.bf16.msrb.mxu0 %v2864_v8  ;;  %1191 = vmatpush.bf16.msrb.mxu1 %v2871_v53  ;;  %v834_v11 = vpack.c.bf16 %v744_v58, %v738_v5  ;;  %v3509_v8 = vld [vmem:[#allocation14_spill] sm:$0xff] }
 0x138   :  { %v2942_v53 = vpack.c.bf16 %v3509_v8, %v2775_v24  ;;  %v1809_v24 = vld [vmem:[#allocation7 + $0x40] sm:$0xff] }
 0x139   :  { %v2957_v39 = vpack.c.bf16 %v3512_v61, %v1809_v24 }
 0x13b   :  { %1143 = vmatpush.bf16.msrb.mxu0 %v839_v50  ;;  %1192 = vmatpush.bf16.msrb.mxu1 %v840_v56 }
 0x13f   :  { %1144 = vmatpush.bf16.msrb.mxu0 %v833_v16  ;;  %1193 = vmatpush.bf16.msrb.mxu1 %v834_v11 }
 0x140   :  { %v2991_v13 = vpop.permute.xlu2 %926 }
 0x142   :  { %959 = vmatmul.bf16.gmra.mxu0 %v2942_v53  ;;  %1008 = vmatmul.bf16.gmra.mxu1 %v2942_v53 }
 0x144   :  { %1057 = vmatmul.bf16.gmra.mxu2 %v2942_v53  ;;  %1106 = vmatmul.bf16.gmra.mxu3 %v2942_v53 }
 0x14c   :  { %v2997_v60 = vpop.permute.xlu2 %918 }
 0x152   :  { %964 = vmatmul.bf16.gmra.mxu0 %v2950_v12  ;;  %1013 = vmatmul.bf16.gmra.mxu1 %v2950_v12 }
 0x154   :  { %1062 = vmatmul.bf16.gmra.mxu2 %v2950_v12  ;;  %1111 = vmatmul.bf16.gmra.mxu3 %v2950_v12 }
 0x155   :  { %v2969_v51 = vpop.permute.xlu1 %938  ;;  %v3005_v37 = vpop.permute.xlu2 %914 }
 0x156   :  { %v2973_v46 = vpop.permute.xlu0 %934 }
 0x15d   :  { %v2979_v0 = vpop.permute.xlu1 %930  ;;  %v3023_v18 = vpop.permute.xlu2 %894 }
 0x162   :  { %969 = vmatmul.bf16.gmra.mxu0 %v2957_v39  ;;  %1018 = vmatmul.bf16.gmra.mxu1 %v2957_v39  ;;  %v2981_v63 = vpop.permute.xlu0 %922 }
 0x164   :  { %1067 = vmatmul.bf16.gmra.mxu2 %v2957_v39  ;;  %1116 = vmatmul.bf16.gmra.mxu3 %v2957_v39 }
 0x165   :  { %v3027_v5 = vpop.permute.xlu2 %890 }
 0x169   :  { %v2985_v10 = vpop.permute.xlu1 %910 }
 0x16b   :  { %v2993_v2 = vpop.permute.xlu0 %902 }
 0x16c   :  { %3513 = vst [vmem:[#allocation12_spill] sm:$0xff] %v2993_v2 }
 0x172   :  { %974 = vmatmul.bf16.gmra.mxu0 %v2963_v36  ;;  %1023 = vmatmul.bf16.gmra.mxu1 %v2963_v36  ;;  %v2995_v6 = vpop.permute.xlu1 %906 }
 0x173   :  { %3514 = vst [vmem:[#allocation30_spill] sm:$0xff] %v2995_v6  ;;  %v2999_v32 = vpop.permute.xlu0 %898 }
 0x174   :  { %1072 = vmatmul.bf16.gmra.mxu2 %v2963_v36  ;;  %1121 = vmatmul.bf16.gmra.mxu3 %v2963_v36  ;;  %3515 = vst [vmem:[#allocation13_spill] sm:$0xff] %v2999_v32 }
 0x17a   :  { %v3003_v9 = vpop.permute.xlu1 %886 }
 0x17b   :  { %v3007_v33 = vpop.permute.xlu0 %878 }
 0x182   :  { %979 = vmatmul.bf16.gmra.mxu0 %v2971_v47  ;;  %1028 = vmatmul.bf16.gmra.mxu1 %v2971_v47  ;;  %v3011_v21 = vpop.permute.xlu1 %882 }
 0x184   :  { %1077 = vmatmul.bf16.gmra.mxu2 %v2971_v47  ;;  %1126 = vmatmul.bf16.gmra.mxu3 %v2971_v47 }
 0x192   :  { %984 = vmatmul.bf16.gmra.mxu0 %v2983_v23  ;;  %1033 = vmatmul.bf16.gmra.mxu1 %v2983_v23 }
 0x194   :  { %1082 = vmatmul.bf16.gmra.mxu2 %v2983_v23  ;;  %1131 = vmatmul.bf16.gmra.mxu3 %v2983_v23 }
 0x19f   :  { %v950_v40 = vpop.f32.mrf.mxu0  ;;  %v999_v59 = vpop.f32.mrf.mxu1 }
 0x1a0   :  { %v1000_v26 = vadd.f32 %v999_v59, %v3007_v33 }
 0x1a2   :  { %1145 = vmatmul.bf16.vlgmr.msrb.gmra.mxu0 %v2874_v62  ;;  %1194 = vmatmul.bf16.vlgmr.msrb.gmra.mxu1 %v2874_v62 }
 0x1a7   :  { %v1048_v55 = vpop.f32.mrf.mxu2  ;;  %v1097_v54 = vpop.f32.mrf.mxu3 }
 0x1a8   :  { %v952_v49 = vpop.f32.mrf.mxu0  ;;  %v1001_v42 = vpop.f32.mrf.mxu1  ;;  %v1049_v3 = vadd.f32 %v1048_v55, %v3007_v33  ;;  %v1098_v30 = vadd.f32 %v1097_v54, %v3007_v33  ;;  %v951_v54 = vadd.f32 %v950_v40, %v3007_v33 }
 0x1a9   :  { %v953_v31 = vadd.f32 %v952_v49, %v3011_v21  ;;  %v1002_v28 = vadd.f32 %v1001_v42, %v3011_v21 }
 0x1aa   :  { %v1237_v1 = vmax.f32 %v1049_v3, 0.0  ;;  %v1238_v62 = vmax.f32 %v1098_v30, 0.0 }
 0x1af   :  { %v1050_v25 = vpop.f32.mrf.mxu2  ;;  %v1099_v52 = vpop.f32.mrf.mxu3 }
 0x1b0   :  { %v1051_v27 = vadd.f32 %v1050_v25, %v3011_v21  ;;  %v1100_v43 = vadd.f32 %v1099_v52, %v3011_v21  ;;  %v3015_v35 = vpop.f32.mrf.mxu0  ;;  %v1004_v29 = vpop.f32.mrf.mxu1  ;;  %v1236_v25 = vmax.f32 %v1000_v26, 0.0  ;;  %v1241_v52 = vmax.f32 %v953_v31, 0.0 }
 0x1b1   :  { %v956_v26 = vadd.f32 %v3015_v35, %v3003_v9 }
 0x1b2   :  { %v1243_v44 = vmax.f32 %v1051_v27, 0.0  ;;  %v1244_v57 = vmax.f32 %v1100_v43, 0.0  ;;  %1150 = vmatmul.bf16.gmra.mxu0 %v2918_v34  ;;  %1199 = vmatmul.bf16.gmra.mxu1 %v2918_v34 }
 0x1b4   :  { %v3019_v20 = vpack.c.bf16 %v1243_v44, %v1237_v1  ;;  %v3021_v17 = vpack.c.bf16 %v1244_v57, %v1238_v62  ;;  %v1242_v1 = vmax.f32 %v1002_v28, 0.0 }
 0x1b6   :  { %3516 = vst [vmem:[#allocation15_spill] sm:$0xff] %v3019_v20  ;;  %v3049_v59 = vpack.c.bf16 %v1242_v1, %v1236_v25 }
 0x1b7   :  { %3517 = vst [vmem:[#allocation17_spill] sm:$0xff] %v3021_v17  ;;  %v1053_v4 = vpop.f32.mrf.mxu2  ;;  %v1102_v22 = vpop.f32.mrf.mxu3 }
 0x1b8   :  { %v957_v38 = vpop.f32.mrf.mxu0  ;;  %v1006_v50 = vpop.f32.mrf.mxu1  ;;  %v1054_v56 = vadd.f32 %v1053_v4, %v3003_v9  ;;  %v1103_v45 = vadd.f32 %v1102_v22, %v3003_v9 }
 0x1ba   :  { %v1249_v16 = vmax.f32 %v1054_v56, 0.0  ;;  %v1250_v34 = vmax.f32 %v1103_v45, 0.0 }
 0x1bf   :  { %v1055_v41 = vpop.f32.mrf.mxu2  ;;  %v1104_v58 = vpop.f32.mrf.mxu3 }
 0x1c0   :  { %v1056_v11 = vadd.f32 %v1055_v41, %v3027_v5  ;;  %v1105_v8 = vadd.f32 %v1104_v58, %v3027_v5  ;;  %v3031_v7 = vpop.f32.mrf.mxu0  ;;  %v3033_v15 = vpop.f32.mrf.mxu1 }
 0x1c2   :  { %v1255_v24 = vmax.f32 %v1056_v11, 0.0  ;;  %v1256_v61 = vmax.f32 %v1105_v8, 0.0  ;;  %1155 = vmatmul.bf16.gmra.mxu0 %v2942_v53  ;;  %1204 = vmatmul.bf16.gmra.mxu1 %v2942_v53  ;;  %v1235_v53 = vmax.f32 %v951_v54, 0.0  ;;  %v958_v11 = vadd.f32 %v957_v38, %v3027_v5 }
 0x1c3   :  { %v1007_v8 = vadd.f32 %v1006_v50, %v3027_v5  ;;  %v1247_v54 = vmax.f32 %v956_v26, 0.0 }
 0x1c4   :  { %v3037_v48 = vpack.c.bf16 %v1255_v24, %v1249_v16  ;;  %v3039_v19 = vpack.c.bf16 %v1256_v61, %v1250_v34  ;;  %v3047_v43 = vpack.c.bf16 %v1241_v52, %v1235_v53  ;;  %v1005_v34 = vadd.f32 %v1004_v29, %v3003_v9 }
 0x1c6   :  { %3518 = vst [vmem:[#allocation16_spill] sm:$0xff] %v3037_v48 }
 0x1c7   :  { %3519 = vst [vmem:[#allocation18_spill] sm:$0xff] %v3039_v19  ;;  %v1058_v14 = vpop.f32.mrf.mxu2  ;;  %v1107_v55 = vpop.f32.mrf.mxu3 }
 0x1c8   :  { %v962_v3 = vpop.f32.mrf.mxu0  ;;  %v1011_v30 = vpop.f32.mrf.mxu1  ;;  %v1059_v62 = vadd.f32 %v1058_v14, %v3023_v18  ;;  %v1108_v27 = vadd.f32 %v1107_v55, %v3023_v18  ;;  %v1248_v14 = vmax.f32 %v1005_v34, 0.0  ;;  %v1253_v55 = vmax.f32 %v958_v11, 0.0 }
 0x1c9   :  { %v1012_v34 = vadd.f32 %v1011_v30, %v2999_v32 }
 0x1ca   :  { %v1261_v44 = vmax.f32 %v1059_v62, 0.0  ;;  %v1262_v57 = vmax.f32 %v1108_v27, 0.0  ;;  %v3066_v29 = vpack.c.bf16 %v1253_v55, %v1247_v54 }
 0x1cb   :  { %v1266_v55 = vmax.f32 %v1012_v34, 0.0 }
 0x1cf   :  { %v1060_v49 = vpop.f32.mrf.mxu2  ;;  %v1109_v42 = vpop.f32.mrf.mxu3 }
 0x1d0   :  { %v1061_v40 = vadd.f32 %v1060_v49, %v2999_v32  ;;  %v1110_v4 = vadd.f32 %v1109_v42, %v2999_v32  ;;  %v965_v22 = vpop.f32.mrf.mxu0  ;;  %v1014_v56 = vpop.f32.mrf.mxu1 }
 0x1d2   :  { %v1267_v45 = vmax.f32 %v1061_v40, 0.0  ;;  %v1268_v41 = vmax.f32 %v1110_v4, 0.0  ;;  %1160 = vmatmul.bf16.gmra.mxu0 %v2950_v12  ;;  %1209 = vmatmul.bf16.gmra.mxu1 %v2950_v12  ;;  %v1254_v12 = vmax.f32 %v1007_v8, 0.0 }
 0x1d4   :  { %v3055_v58 = vpack.c.bf16 %v1267_v45, %v1261_v44  ;;  %v3057_v16 = vpack.c.bf16 %v1268_v41, %v1262_v57  ;;  %v3068_v38 = vpack.c.bf16 %v1254_v12, %v1248_v14  ;;  %v1010_v45 = vadd.f32 %v3033_v15, %v3023_v18 }
 0x1d5   :  { %v963_v41 = vadd.f32 %v962_v3, %v2999_v32 }
 0x1d6   :  { %3520 = vst [vmem:[#allocation38_spill] sm:$0xff] %v3055_v58  ;;  %v1260_v26 = vmax.f32 %v1010_v45, 0.0 }
 0x1d7   :  { %3521 = vst [vmem:[#allocation28_spill] sm:$0xff] %v3057_v16  ;;  %v1063_v24 = vpop.f32.mrf.mxu2  ;;  %v1112_v61 = vpop.f32.mrf.mxu3  ;;  %v1265_v14 = vmax.f32 %v963_v41, 0.0 }
 0x1d8   :  { %v967_v31 = vpop.f32.mrf.mxu0  ;;  %v1016_v28 = vpop.f32.mrf.mxu1  ;;  %v1064_v25 = vadd.f32 %v1063_v24, %v2993_v2  ;;  %v1113_v52 = vadd.f32 %v1112_v61, %v2993_v2  ;;  %v961_v24 = vadd.f32 %v3031_v7, %v3023_v18  ;;  %v3098_v3 = vpack.c.bf16 %v1266_v55, %v1260_v26 }
 0x1d9   :  { %v1015_v7 = vadd.f32 %v1014_v56, %v2993_v2 }
 0x1da   :  { %v1273_v53 = vmax.f32 %v1064_v25, 0.0  ;;  %v1274_v62 = vmax.f32 %v1113_v52, 0.0  ;;  %v1259_v12 = vmax.f32 %v961_v24, 0.0 }
 0x1dc   :  { %v3096_v15 = vpack.c.bf16 %v1265_v14, %v1259_v12 }
 0x1df   :  { %v1065_v50 = vpop.f32.mrf.mxu2  ;;  %v1114_v1 = vpop.f32.mrf.mxu3 }
 0x1e0   :  { %v1066_v35 = vadd.f32 %v1065_v50, %v2995_v6  ;;  %v1115_v27 = vadd.f32 %v1114_v1, %v2995_v6  ;;  %v3072_v49 = vpop.f32.mrf.mxu0  ;;  %v3074_v42 = vpop.f32.mrf.mxu1  ;;  %v968_v50 = vadd.f32 %v967_v31, %v2995_v6  ;;  %v1017_v1 = vadd.f32 %v1016_v28, %v2995_v6 }
 0x1e2   :  { %v1279_v44 = vmax.f32 %v1066_v35, 0.0  ;;  %v1280_v57 = vmax.f32 %v1115_v27, 0.0  ;;  %1165 = vmatmul.bf16.gmra.mxu0 %v2957_v39  ;;  %1214 = vmatmul.bf16.gmra.mxu1 %v2957_v39  ;;  %v1272_v27 = vmax.f32 %v1015_v7, 0.0 }
 0x1e4   :  { %v3078_v40 = vpack.c.bf16 %v1279_v44, %v1273_v53  ;;  %v3080_v4 = vpack.c.bf16 %v1280_v57, %v1274_v62  ;;  %v966_v53 = vadd.f32 %v965_v22, %v2993_v2  ;;  %v1277_v44 = vmax.f32 %v968_v50, 0.0 }
 0x1e5   :  { %v1278_v57 = vmax.f32 %v1017_v1, 0.0 }
 0x1e6   :  { %3522 = vst [vmem:[#allocation29_spill] sm:$0xff] %v3078_v40  ;;  %v1271_v34 = vmax.f32 %v966_v53, 0.0 }
 0x1e7   :  { %3523 = vst [vmem:[#allocation20_spill] sm:$0xff] %v3080_v4  ;;  %v3086_v11 = vpop.f32.mrf.mxu2  ;;  %v3088_v8 = vpop.f32.mrf.mxu3 }
 0x1e8   :  { %v3092_v61 = vpop.f32.mrf.mxu0  ;;  %v3094_v39 = vpop.f32.mrf.mxu1  ;;  %v3114_v24 = vpack.c.bf16 %v1277_v44, %v1271_v34 }
 0x1ef   :  { %v3100_v25 = vpop.f32.mrf.mxu2  ;;  %v3102_v52 = vpop.f32.mrf.mxu3 }
 0x1f0   :  { %v975_v30 = vpop.f32.mrf.mxu0  ;;  %v1024_v54 = vpop.f32.mrf.mxu1 }
 0x1f2   :  { %1170 = vmatmul.bf16.gmra.mxu0 %v2963_v36  ;;  %1219 = vmatmul.bf16.gmra.mxu1 %v2963_v36  ;;  %v3116_v36 = vpack.c.bf16 %v1278_v57, %v1272_v27 }
 0x1f7   :  { %v3110_v45 = vpop.f32.mrf.mxu2  ;;  %v3112_v41 = vpop.f32.mrf.mxu3 }
 0x1f8   :  { %v977_v62 = vpop.f32.mrf.mxu0  ;;  %v1026_v35 = vpop.f32.mrf.mxu1 }
 0x1f9   :  { %v978_v48 = vadd.f32 %v977_v62, %v2981_v63  ;;  %v1022_v62 = vadd.f32 %v3094_v39, %v3005_v37 }
 0x1ff   :  { %v3120_v22 = vpop.f32.mrf.mxu2  ;;  %v3122_v28 = vpop.f32.mrf.mxu3 }
 0x200   :  { %v980_v56 = vpop.f32.mrf.mxu0  ;;  %v1029_v31 = vpop.f32.mrf.mxu1 }
 0x201   :  { %v1030_v53 = vadd.f32 %v1029_v31, %v2991_v13 }
 0x202   :  { %1175 = vmatmul.bf16.gmra.mxu0 %v2971_v47  ;;  %1224 = vmatmul.bf16.gmra.mxu1 %v2971_v47 }
 0x203   :  { %v1308_v16 = vmax.f32 %v1030_v53, 0.0  ;;  %v1301_v53 = vmax.f32 %v978_v48, 0.0 }
 0x207   :  { %v3124_v55 = vpop.f32.mrf.mxu2  ;;  %v3126_v12 = vpop.f32.mrf.mxu3 }
 0x208   :  { %v982_v26 = vpop.f32.mrf.mxu0  ;;  %v1031_v14 = vpop.f32.mrf.mxu1 }
 0x209   :  { %v983_v27 = vadd.f32 %v982_v26, %v2979_v0  ;;  %v1032_v34 = vadd.f32 %v1031_v14, %v2979_v0  ;;  %v1025_v26 = vadd.f32 %v1024_v54, %v2997_v60  ;;  %v1027_v14 = vadd.f32 %v1026_v35, %v2981_v63 }
 0x20a   :  { %v973_v54 = vadd.f32 %v3092_v61, %v3005_v37 }
 0x20b   :  { %v1313_v58 = vmax.f32 %v983_v27, 0.0  ;;  %v1314_v4 = vmax.f32 %v1032_v34, 0.0  ;;  %v1296_v35 = vmax.f32 %v1025_v26, 0.0 }
 0x20c   :  { %v1289_v61 = vmax.f32 %v973_v54, 0.0 }
 0x20d   :  { %v1368_v27 = vpack.c.bf16 %v1314_v4, %v1308_v16 }
 0x20f   :  { %v3135_v6 = vpop.f32.mrf.mxu2  ;;  %v3137_v17 = vpop.f32.mrf.mxu3 }
 0x210   :  { %v985_v7 = vpop.f32.mrf.mxu0  ;;  %v1034_v50 = vpop.f32.mrf.mxu1 }
 0x211   :  { %v1035_v1 = vadd.f32 %v1034_v50, %v2973_v46  ;;  %v986_v47 = vadd.f32 %v985_v7, %v2973_v46  ;;  %v981_v50 = vadd.f32 %v980_v56, %v2991_v13 }
 0x212   :  { %1180 = vmatmul.bf16.gmra.mxu0 %v2983_v23  ;;  %1229 = vmatmul.bf16.gmra.mxu1 %v2983_v23 }
 0x213   :  { %v1320_v20 = vmax.f32 %v1035_v1, 0.0  ;;  %v1319_v7 = vmax.f32 %v986_v47, 0.0  ;;  %v1307_v32 = vmax.f32 %v981_v50, 0.0 }
 0x217   :  { %v1132_v34 = vpop.f32.mrf.mxu3 }
 0x218   :  { %v987_v44 = vpop.f32.mrf.mxu0  ;;  %v1036_v57 = vpop.f32.mrf.mxu1 }
 0x219   :  { %v988_v2 = vadd.f32 %v987_v44, %v2969_v51  ;;  %v1037_v23 = vadd.f32 %v1036_v57, %v2969_v51  ;;  %v976_v44 = vadd.f32 %v975_v30, %v2997_v60  ;;  %v1083_v57 = vpop.f32.mrf.mxu2 }
 0x21b   :  { %v1325_v19 = vmax.f32 %v988_v2, 0.0  ;;  %v1326_v31 = vmax.f32 %v1037_v23, 0.0  ;;  %v1020_v2 = vadd.f32 %v3074_v42, %v2985_v10  ;;  %v1295_v30 = vmax.f32 %v976_v44, 0.0 }
 0x21c   :  { %v1290_v23 = vmax.f32 %v1022_v62, 0.0 }
 0x21d   :  { %v1373_v40 = vpack.c.bf16 %v1325_v19, %v1319_v7  ;;  %v1374_v1 = vpack.c.bf16 %v1326_v31, %v1320_v20  ;;  %v1302_v19 = vmax.f32 %v1027_v14, 0.0  ;;  %v1367_v20 = vpack.c.bf16 %v1313_v58, %v1307_v32 }
 0x21e   :  { %v1284_v42 = vmax.f32 %v1020_v2, 0.0  ;;  %v1361_v50 = vpack.c.bf16 %v1301_v53, %v1295_v30 }
 0x21f   :  { %1387 = vmatpush.bf16.msrb.mxu2 %v1373_v40  ;;  %1401 = vmatpush.bf16.msrb.mxu3 %v1374_v1  ;;  %v971_v40 = vadd.f32 %v3072_v49, %v2985_v10  ;;  %v1362_v7 = vpack.c.bf16 %v1302_v19, %v1296_v35  ;;  %v1134_v62 = vpop.f32.mrf.mxu3 }
 0x220   :  { %v1146_v56 = vpop.f32.mrf.mxu0  ;;  %v1195_v47 = vpop.f32.mrf.mxu1  ;;  %v1356_v14 = vpack.c.bf16 %v1290_v23, %v1284_v42  ;;  %v1135_v53 = vadd.f32 %v1134_v62, %v2969_v51 }
 0x221   :  { %v1196_v39 = vadd.f32 %v1195_v47, %v3007_v33  ;;  %v1283_v31 = vmax.f32 %v971_v40, 0.0  ;;  %v1147_v48 = vadd.f32 %v1146_v56, %v3007_v33  ;;  %v1085_v54 = vpop.f32.mrf.mxu2  ;;  %v1084_v56 = vadd.f32 %v1083_v57, %v2973_v46 }
 0x222   :  { %v1086_v47 = vadd.f32 %v1085_v54, %v2969_v51  ;;  %v1128_v40 = vadd.f32 %v3126_v12, %v2991_v13  ;;  %v1328_v42 = vmax.f32 %v1135_v53, 0.0  ;;  %v1123_v12 = vadd.f32 %v3112_v41, %v2997_v60 }
 0x223   :  { %1388 = vmatpush.bf16.msrb.mxu2 %v1367_v20  ;;  %1402 = vmatpush.bf16.msrb.mxu3 %v1368_v27  ;;  %v1355_v16 = vpack.c.bf16 %v1289_v61, %v1283_v31  ;;  %v1240_v49 = vmax.f32 %v1196_v39, 0.0  ;;  %v1239_v1 = vmax.f32 %v1147_v48, 0.0  ;;  %v1079_v27 = vadd.f32 %v3124_v55, %v2991_v13 }
 0x224   :  { %v1321_v30 = vmax.f32 %v1084_v56, 0.0  ;;  %v1074_v55 = vadd.f32 %v3110_v45, %v2997_v60 }
 0x227   :  { %1389 = vmatpush.bf16.msrb.mxu2 %v1361_v50  ;;  %1403 = vmatpush.bf16.msrb.mxu3 %v1362_v7 }
 0x228   :  { %v1148_v32 = vpop.f32.mrf.mxu0  ;;  %v1197_v58 = vpop.f32.mrf.mxu1 }
 0x229   :  { %v1149_v4 = vadd.f32 %v1148_v32, %v3011_v21  ;;  %v1198_v26 = vadd.f32 %v1197_v58, %v3011_v21  ;;  %v1133_v21 = vadd.f32 %v1132_v34, %v2973_v46  ;;  %v1327_v34 = vmax.f32 %v1086_v47, 0.0 }
 0x22a   :  { %v1297_v58 = vmax.f32 %v1074_v55, 0.0  ;;  %v3526_v55 = vld [vmem:[#allocation20_spill] sm:$0xff] }
 0x22b   :  { %v1245_v44 = vmax.f32 %v1149_v4, 0.0  ;;  %v1246_v2 = vmax.f32 %v1198_v26, 0.0  ;;  %1390 = vmatpush.bf16.msrb.mxu2 %v1355_v16  ;;  %1404 = vmatpush.bf16.msrb.mxu3 %v1356_v14  ;;  %v1322_v57 = vmax.f32 %v1133_v21, 0.0  ;;  %v1375_v45 = vpack.c.bf16 %v1327_v34, %v1321_v30 }
 0x22c   :  { %v1298_v16 = vmax.f32 %v1123_v12, 0.0 }
 0x22d   :  { %v3158_v35 = vpack.c.bf16 %v1245_v44, %v1239_v1  ;;  %v3160_v33 = vpack.c.bf16 %v1246_v2, %v1240_v49  ;;  %v1376_v7 = vpack.c.bf16 %v1328_v42, %v1322_v57 }
 0x22f   :  { %1391 = vmatpush.bf16.msrb.mxu2 %v3114_v24  ;;  %1405 = vmatpush.bf16.msrb.mxu3 %v3116_v36  ;;  %v1081_v24 = vadd.f32 %v3135_v6, %v2979_v0  ;;  %v1130_v36 = vadd.f32 %v3137_v17, %v2979_v0  ;;  %v1076_v6 = vadd.f32 %v3120_v22, %v2981_v63 }
 0x230   :  { %v1151_v19 = vpop.f32.mrf.mxu0  ;;  %v1200_v20 = vpop.f32.mrf.mxu1  ;;  %v1125_v17 = vadd.f32 %v3122_v28, %v2981_v63  ;;  %v1069_v22 = vadd.f32 %v3086_v11, %v2985_v10 }
 0x231   :  { %v1201_v61 = vadd.f32 %v1200_v20, %v3003_v9  ;;  %v1152_v23 = vadd.f32 %v1151_v19, %v3003_v9  ;;  %v1315_v39 = vmax.f32 %v1081_v24, 0.0  ;;  %v1316_v50 = vmax.f32 %v1130_v36, 0.0  ;;  %v3524_v24 = vld [vmem:[#allocation13_spill] sm:$0xff] }
 0x232   :  { %v1118_v9 = vadd.f32 %v3088_v8, %v2985_v10  ;;  %v1303_v11 = vmax.f32 %v1076_v6, 0.0 }
 0x233   :  { %1392 = vmatpush.bf16.msrb.mxu2 %v3096_v15  ;;  %1406 = vmatpush.bf16.msrb.mxu3 %v3098_v3  ;;  %v1309_v15 = vmax.f32 %v1079_v27, 0.0  ;;  %v1310_v3 = vmax.f32 %v1128_v40, 0.0  ;;  %v1252_v48 = vmax.f32 %v1201_v61, 0.0  ;;  %v1251_v49 = vmax.f32 %v1152_v23, 0.0  ;;  %v3525_v61 = vld [vmem:[#allocation29_spill] sm:$0xff]  ;;  %v3529_v23 = vld [vmem:[#allocation16_spill] sm:$0xff] }
 0x234   :  { %v1286_v44 = vmax.f32 %v1118_v9, 0.0  ;;  %v1363_v62 = vpack.c.bf16 %v1303_v11, %v1297_v58 }
 0x235   :  { %v1369_v14 = vpack.c.bf16 %v1315_v39, %v1309_v15  ;;  %v1370_v1 = vpack.c.bf16 %v1316_v50, %v1310_v3  ;;  %v3527_v15 = vld [vmem:[#allocation38_spill] sm:$0xff]  ;;  %v3528_v3 = vld [vmem:[#allocation28_spill] sm:$0xff] }
 0x236   :  { %v3530_v39 = vld [vmem:[#allocation18_spill] sm:$0xff]  ;;  %v3531_v50 = vld [vmem:[#allocation12_spill] sm:$0xff] }
 0x237   :  { %1393 = vmatpush.bf16.msrb.mxu2 %v3066_v29  ;;  %1407 = vmatpush.bf16.msrb.mxu3 %v3068_v38  ;;  %v1071_v29 = vadd.f32 %v3100_v25, %v3005_v37  ;;  %v1120_v38 = vadd.f32 %v3102_v52, %v3005_v37  ;;  %v1285_v52 = vmax.f32 %v1069_v22, 0.0  ;;  %v3532_v22 = vld [vmem:[#allocation15_spill] sm:$0xff] }
 0x238   :  { %v1153_v31 = vpop.f32.mrf.mxu0  ;;  %v1202_v41 = vpop.f32.mrf.mxu1 }
 0x239   :  { %v1154_v28 = vadd.f32 %v1153_v31, %v3027_v5  ;;  %v1203_v32 = vadd.f32 %v1202_v41, %v3027_v5  ;;  %v1304_v5 = vmax.f32 %v1125_v17, 0.0  ;;  %v1291_v2 = vmax.f32 %v1071_v29, 0.0 }
 0x23a   :  { %v1292_v54 = vmax.f32 %v1120_v38, 0.0 }
 0x23b   :  { %v1257_v4 = vmax.f32 %v1154_v28, 0.0  ;;  %v1258_v26 = vmax.f32 %v1203_v32, 0.0  ;;  %1394 = vmatpush.bf16.msrb.mxu2 %v3047_v43  ;;  %1408 = vmatpush.bf16.msrb.mxu3 %v3049_v59  ;;  %v1364_v56 = vpack.c.bf16 %v1304_v5, %v1298_v16  ;;  %v1357_v59 = vpack.c.bf16 %v1291_v2, %v1285_v52  ;;  %v3534_v32 = vld [vmem:[#allocation30_spill] sm:$0xff]  ;;  %v77_v5 = vld [vmem:[#allocation7 + $0x80] sm:$0xff] }
 0x23c   :  { %v1358_v47 = vpack.c.bf16 %v1292_v54, %v1286_v44 }
 0x23d   :  { %v3202_v8 = vpack.c.bf16 %v1257_v4, %v1251_v49  ;;  %v3204_v25 = vpack.c.bf16 %v1258_v26, %v1252_v48  ;;  %v3533_v48 = vld [vmem:[#allocation17_spill] sm:$0xff] }
 0x23f   :  { %1415 = vmatpush.bf16.msra.mxu2 %v1375_v45  ;;  %1429 = vmatpush.bf16.msra.mxu3 %v1376_v7 }
 0x240   :  { %v1156_v21 = vpop.f32.mrf.mxu0  ;;  %v1205_v43 = vpop.f32.mrf.mxu1 }
 0x241   :  { %v1206_v53 = vadd.f32 %v1205_v43, %v3023_v18  ;;  %v1157_v19 = vadd.f32 %v1156_v21, %v3023_v18 }
 0x243   :  { %1416 = vmatpush.bf16.msra.mxu2 %v1369_v14  ;;  %1430 = vmatpush.bf16.msra.mxu3 %v1370_v1  ;;  %v1264_v40 = vmax.f32 %v1206_v53, 0.0  ;;  %v1263_v57 = vmax.f32 %v1157_v19, 0.0  ;;  %v78_v14 = vld [vmem:[#allocation7 + $0x88] sm:$0xff]  ;;  %v1928_v19 = vmov 17  }
 0x244   :  { %v3234_v1 = vpack.c.bf16 %v78_v14, %v77_v5  ;;  %1767 = vset.pattern.permute.xlu1 %v1928_v19 }
 0x246   :  { %1395 = vmatmul.bf16.vlgmr.msrb.gmra.mxu2 %v3234_v1  ;;  %1409 = vmatmul.bf16.vlgmr.msrb.gmra.mxu3 %v3234_v1 }
 0x247   :  { %1417 = vmatpush.bf16.msra.mxu2 %v1363_v62  ;;  %1431 = vmatpush.bf16.msra.mxu3 %v1364_v56  ;;  %v3238_v62 = vld [vmem:[#allocation7 + $0x98] sm:$0xff]  ;;  %v1927_v56 = vmov 16  }
 0x248   :  { %v1158_v20 = vpop.f32.mrf.mxu0  ;;  %v1207_v27 = vpop.f32.mrf.mxu1  ;;  %1765 = vset.pattern.permute.xlu0 %v1927_v56  ;;  %1764 = vset.pattern.permute.xlu2 %v1927_v56 }
 0x249   :  { %v1159_v36 = vadd.f32 %v1158_v20, %v3524_v24  ;;  %v1208_v30 = vadd.f32 %v1207_v27, %v3524_v24  ;;  %98 = vperm.xlu0 %1765, %v3238_v62  }
 0x24b   :  { %1418 = vmatpush.bf16.msra.mxu2 %v1357_v59  ;;  %1432 = vmatpush.bf16.msra.mxu3 %v1358_v47  ;;  %v1269_v34 = vmax.f32 %v1159_v36, 0.0  ;;  %v1270_v42 = vmax.f32 %v1208_v30, 0.0  ;;  %v3243_v59 = vld [vmem:[#allocation7 + $0x90] sm:$0xff] }
 0x24c   :  { %93 = vperm.xlu2 %1764, %v3243_v59  }
 0x24d   :  { %v3212_v12 = vpack.c.bf16 %v1269_v34, %v1263_v57  ;;  %v3214_v6 = vpack.c.bf16 %v1270_v42, %v1264_v40 }
 0x24f   :  { %1419 = vmatpush.bf16.msra.mxu2 %v3525_v61  ;;  %1433 = vmatpush.bf16.msra.mxu3 %v3526_v55 }
 0x250   :  { %v1161_v18 = vpop.f32.mrf.mxu0  ;;  %v1210_v17 = vpop.f32.mrf.mxu1 }
 0x251   :  { %v1211_v45 = vadd.f32 %v1210_v17, %v3531_v50  ;;  %v1162_v7 = vadd.f32 %v1161_v18, %v3531_v50  ;;  %1766 = vset.pattern.permute.xlu0 %v1928_v19 }
 0x252   :  { %1380 = vperm.xlu0 %1766, %v3243_v59  }
 0x253   :  { %1420 = vmatpush.bf16.msra.mxu2 %v3527_v15  ;;  %1434 = vmatpush.bf16.msra.mxu3 %v3528_v3  ;;  %v1276_v28 = vmax.f32 %v1211_v45, 0.0  ;;  %v1275_v38 = vmax.f32 %v1162_v7, 0.0 }
 0x257   :  { %1421 = vmatpush.bf16.msra.mxu2 %v3529_v23  ;;  %1435 = vmatpush.bf16.msra.mxu3 %v3530_v39 }
 0x258   :  { %v1163_v31 = vpop.f32.mrf.mxu0  ;;  %v1212_v41 = vpop.f32.mrf.mxu1 }
 0x259   :  { %v1164_v9 = vadd.f32 %v1163_v31, %v3534_v32  ;;  %v1213_v29 = vadd.f32 %v1212_v41, %v3534_v32 }
 0x25b   :  { %1422 = vmatpush.bf16.msra.mxu2 %v3532_v22  ;;  %1436 = vmatpush.bf16.msra.mxu3 %v3533_v48  ;;  %v1281_v58 = vmax.f32 %v1164_v9, 0.0  ;;  %v1282_v16 = vmax.f32 %v1213_v29, 0.0 }
 0x25d   :  { %v3226_v49 = vpack.c.bf16 %v1281_v58, %v1275_v38  ;;  %v3228_v4 = vpack.c.bf16 %v1282_v16, %v1276_v28 }
 0x25e   :  { %1423 = vmatmul.bf16.vlgmr.msra.gmra.mxu2 %v3234_v1  ;;  %1437 = vmatmul.bf16.vlgmr.msra.gmra.mxu3 %v3234_v1 }
 0x260   :  { %v3230_v26 = vpop.f32.mrf.mxu0  ;;  %v3232_v11 = vpop.f32.mrf.mxu1 }
 0x261   :  { %v1167_v58 = vadd.f32 %v3230_v26, %v2985_v10  ;;  %v1216_v16 = vadd.f32 %v3232_v11, %v2985_v10  ;;  %v1471_v10 = vld [vmem:[#allocation5] sm:$0xff]  ;;  %v1472_v26 = vld [vmem:[#allocation5 + $0x8] sm:$0xff]  ;;  %v1474_v11 = vld [vmem:[#allocation5 + $0x10] sm:$0xff] }
 0x263   :  { %v1287_v56 = vmax.f32 %v1167_v58, 0.0 }
 0x268   :  { %v1168_v52 = vpop.f32.mrf.mxu0  ;;  %v1217_v44 = vpop.f32.mrf.mxu1 }
 0x269   :  { %v1218_v32 = vadd.f32 %v1217_v44, %v3005_v37 }
 0x270   :  { %v1171_v2 = vpop.f32.mrf.mxu0  ;;  %v1220_v54 = vpop.f32.mrf.mxu1 }
 0x271   :  { %v1172_v22 = vadd.f32 %v1171_v2, %v2997_v60  ;;  %v1294_v2 = vmax.f32 %v1218_v32, 0.0 }
 0x273   :  { %v1299_v5 = vmax.f32 %v1172_v22, 0.0 }
 0x278   :  { %v1173_v21 = vpop.f32.mrf.mxu0  ;;  %v1222_v43 = vpop.f32.mrf.mxu1 }
 0x279   :  { %v1223_v45 = vadd.f32 %v1222_v43, %v2981_v63  ;;  %v1475_v43 = vld [vmem:[#allocation5 + $0x18] sm:$0xff] }
 0x27b   :  { %v1306_v29 = vmax.f32 %v1223_v45, 0.0 }
 0x280   :  { %v1176_v47 = vpop.f32.mrf.mxu0  ;;  %v1225_v53 = vpop.f32.mrf.mxu1 }
 0x281   :  { %v1177_v17 = vadd.f32 %v1176_v47, %v2991_v13  ;;  %v1226_v15 = vadd.f32 %v1225_v53, %v2991_v13  ;;  %v1169_v13 = vadd.f32 %v1168_v52, %v3005_v37  ;;  %v1288_v37 = vmax.f32 %v1216_v16, 0.0 }
 0x282   :  { %v1476_v47 = vpack.c.bf16 %v1472_v26, %v1471_v10  ;;  %v1477_v53 = vpack.c.bf16 %v1475_v43, %v1474_v11 }
 0x283   :  { %v1311_v48 = vmax.f32 %v1177_v17, 0.0  ;;  %v1312_v28 = vmax.f32 %v1226_v15, 0.0  ;;  %v1293_v14 = vmax.f32 %v1169_v13, 0.0 }
 0x285   :  { %v1359_v44 = vpack.c.bf16 %v1293_v14, %v1287_v56 }
 0x288   :  { %v1178_v20 = vpop.f32.mrf.mxu0  ;;  %v1227_v27 = vpop.f32.mrf.mxu1 }
 0x289   :  { %v1179_v42 = vadd.f32 %v1178_v20, %v2979_v0  ;;  %v1228_v61 = vadd.f32 %v1227_v27, %v2979_v0 }
 0x28b   :  { %v1317_v7 = vmax.f32 %v1179_v42, 0.0  ;;  %v1318_v31 = vmax.f32 %v1228_v61, 0.0 }
 0x28d   :  { %v1371_v38 = vpack.c.bf16 %v1317_v7, %v1311_v48 }
 0x290   :  { %v1181_v40 = vpop.f32.mrf.mxu0  ;;  %v1230_v24 = vpop.f32.mrf.mxu1 }
 0x291   :  { %v1182_v36 = vadd.f32 %v1181_v40, %v2973_v46  ;;  %v1231_v30 = vadd.f32 %v1230_v24, %v2973_v46  ;;  %v1174_v46 = vadd.f32 %v1173_v21, %v2981_v63  ;;  %v1372_v63 = vpack.c.bf16 %v1318_v31, %v1312_v28 }
 0x292   :  { %v1360_v21 = vpack.c.bf16 %v1294_v2, %v1288_v37 }
 0x293   :  { %v1323_v3 = vmax.f32 %v1182_v36, 0.0  ;;  %v1324_v23 = vmax.f32 %v1231_v30, 0.0  ;;  %v1305_v9 = vmax.f32 %v1174_v46, 0.0 }
 0x298   :  { %v1183_v57 = vpop.f32.mrf.mxu0  ;;  %v1232_v34 = vpop.f32.mrf.mxu1 }
 0x299   :  { %v1184_v55 = vadd.f32 %v1183_v57, %v2969_v51  ;;  %v1233_v18 = vadd.f32 %v1232_v34, %v2969_v51  ;;  %v1221_v51 = vadd.f32 %v1220_v54, %v2997_v60  ;;  %v1365_v54 = vpack.c.bf16 %v1305_v9, %v1299_v5 }
 0x29b   :  { %v1329_v39 = vmax.f32 %v1184_v55, 0.0  ;;  %v1330_v50 = vmax.f32 %v1233_v18, 0.0  ;;  %v1300_v60 = vmax.f32 %v1221_v51, 0.0 }
 0x29d   :  { %v1377_v41 = vpack.c.bf16 %v1329_v39, %v1323_v3  ;;  %v1378_v0 = vpack.c.bf16 %v1330_v50, %v1324_v23  ;;  %v1366_v52 = vpack.c.bf16 %v1306_v29, %v1300_v60 }
 0x29f   :  { %1443 = vmatpush.bf16.msrb.mxu2 %v1377_v41  ;;  %1457 = vmatpush.bf16.msrb.mxu3 %v1378_v0 }
 0x2a3   :  { %1444 = vmatpush.bf16.msrb.mxu2 %v1371_v38  ;;  %1458 = vmatpush.bf16.msrb.mxu3 %v1372_v63 }
 0x2a6   :  { %v94_v38 = vpop.permute.xlu2 %93 }
 0x2a7   :  { %1445 = vmatpush.bf16.msrb.mxu2 %v1365_v54  ;;  %1459 = vmatpush.bf16.msrb.mxu3 %v1366_v52 }
 0x2ab   :  { %1446 = vmatpush.bf16.msrb.mxu2 %v1359_v44  ;;  %1460 = vmatpush.bf16.msrb.mxu3 %v1360_v21 }
 0x2af   :  { %1447 = vmatpush.bf16.msrb.mxu2 %v3226_v49  ;;  %1461 = vmatpush.bf16.msrb.mxu3 %v3228_v4 }
 0x2b3   :  { %1448 = vmatpush.bf16.msrb.mxu2 %v3212_v12  ;;  %1462 = vmatpush.bf16.msrb.mxu3 %v3214_v6  ;;  %v90_v12 = vpack.c.bf16 %v3238_v62, %v3243_v59 }
 0x2b7   :  { %1449 = vmatpush.bf16.msrb.mxu2 %v3202_v8  ;;  %1463 = vmatpush.bf16.msrb.mxu3 %v3204_v25 }
 0x2bb   :  { %1450 = vmatpush.bf16.msrb.mxu2 %v3158_v35  ;;  %1464 = vmatpush.bf16.msrb.mxu3 %v3160_v33  ;;  %v3277_v25 = vpop.permute.xlu0 %98 }
 0x2be   :  { %1451 = vmatmul.bf16.vlgmr.msrb.gmra.mxu2 %v3234_v1  ;;  %1465 = vmatmul.bf16.vlgmr.msrb.gmra.mxu3 %v3234_v1 }
 0x2bf   :  { %1489 = vmatpush.bf16.msra.mxu2 %v1476_v47  ;;  %1503 = vmatpush.bf16.msra.mxu3 %v1477_v53 }
 0x2c4   :  { %v1381_v49 = vpop.permute.xlu0 %1380 }
 0x2c9   :  { %v1396_v8 = vpop.f32.mrf.mxu2  ;;  %v1410_v35 = vpop.f32.mrf.mxu3 }
 0x2ca   :  { %v1397_v33 = vadd.f32 %v1396_v8, %v1381_v49  ;;  %v1411_v4 = vadd.f32 %v1410_v35, %v1381_v49 }
 0x2cc   :  { %v1510_v19 = vmax.f32 %v1397_v33, %v1411_v4 }
 0x2ce   :  { %1710 = vmatmul.msk.bf16.vlgmr.msra.gmra.mxu2 %vm1478_vm0, %v90_v12  ;;  %1711 = vmatmul.msk.bf16.vlgmr.msra.gmra.mxu3 %vm1478_vm0, %v90_v12 }
 0x2d1   :  { %v3279_v6 = vpop.f32.mrf.mxu2  ;;  %v3281_v17 = vpop.f32.mrf.mxu3 }
 0x2e1   :  { %v1424_v20 = vpop.f32.mrf.mxu2  ;;  %v1438_v15 = vpop.f32.mrf.mxu3 }
 0x2e2   :  { %v1425_v27 = vadd.f32 %v1424_v20, %v1381_v49  ;;  %v1439_v46 = vadd.f32 %v1438_v15, %v1381_v49 }
 0x2e4   :  { %v1512_v40 = vmax.f32 %v1510_v19, %v1425_v27 }
 0x2e6   :  { %v1514_v1 = vsub.f32 %v1397_v33, %v1512_v40  ;;  %v1520_v24 = vsub.f32 %v1411_v4, %v1512_v40  ;;  %v1526_v36 = vsub.f32 %v1425_v27, %v1512_v40 }
 0x2e8   :  { %v1516_v59 = vmul.f32 1.442695, %v1514_v1  ;;  %v1522_v30 = vmul.f32 1.442695, %v1520_v24  ;;  %v1528_v57 = vmul.f32 1.442695, %v1526_v36 }
 0x2e9   :  { %v3283_v3 = vpop.f32.mrf.mxu3  ;;  %v3285_v23 = vpop.f32.mrf.mxu2 }
 0x2ea   :  { %1768 = vpow2.f32 %v1516_v59 }
 0x2eb   :  { %1770 = vpow2.f32 %v1522_v30 }
 0x2ec   :  { %1772 = vpow2.f32 %v1528_v57 }
 0x2f0   :  { %v1769_v34 = vpop.eup %1768 }
 0x2f1   :  { %v1771_v42 = vpop.eup %1770 }
 0x2f2   :  { %v1773_v61 = vpop.eup %1772  ;;  %v1532_v55 = vadd.f32 %v1771_v42, %v1769_v34 }
 0x2f4   :  { %v1534_v18 = vadd.f32 %v1773_v61, %v1532_v55 }
 0x2f6   :  { %1774 = vrcp.f32 %v1534_v18 }
 0x2fc   :  { %v1775_v29 = vpop.eup %1774 }
 0x2fd   :  { %v1551_v63 = vmul.f32 %v1775_v29, %v1769_v34  ;;  %v3292_v2 = vmul.f32 %v1775_v29, %v1773_v61  ;;  %v3294_v54 = vmul.f32 %v1775_v29, %v1771_v42 }
 0x341   :  { %v1452_v39 = vpop.f32.mrf.mxu2  ;;  %v1466_v50 = vpop.f32.mrf.mxu3 }
 0x342   :  { %v1453_v45 = vadd.f32 %v1452_v39, %v1381_v49  ;;  %v1467_v7 = vadd.f32 %v1466_v50, %v1381_v49 }
 0x344   :  { %v1601_v31 = vmax.f32 %v1439_v46, %v1453_v45 }
 0x346   :  { %v1603_v41 = vmax.f32 %v1601_v31, %v1467_v7 }
 0x348   :  { %v1605_v0 = vsub.f32 %v1439_v46, %v1603_v41  ;;  %v1611_v22 = vsub.f32 %v1453_v45, %v1603_v41  ;;  %v1617_v51 = vsub.f32 %v1467_v7, %v1603_v41 }
 0x349   :  { %v3287_v48 = vpop.f32.mrf.mxu2  ;;  %v3289_v9 = vpop.f32.mrf.mxu3 }
 0x34a   :  { %v1607_v28 = vmul.f32 1.442695, %v1605_v0  ;;  %v1613_v13 = vmul.f32 1.442695, %v1611_v22  ;;  %v1619_v32 = vmul.f32 1.442695, %v1617_v51 }
 0x34c   :  { %1776 = vpow2.f32 %v1607_v28 }
 0x34d   :  { %1778 = vpow2.f32 %v1613_v13 }
 0x34e   :  { %1780 = vpow2.f32 %v1619_v32 }
 0x351   :  { %v1491_v58 = vpop.f32.mrf.mxu2  ;;  %v1505_v56 = vpop.f32.mrf.mxu3 }
 0x352   :  { %v1777_v16 = vpop.eup %1776  ;;  %v1492_v5 = vadd.f32 %v1491_v58, %v94_v38  ;;  %v1506_v21 = vadd.f32 %v1505_v56, %v94_v38 }
 0x353   :  { %v1779_v60 = vpop.eup %1778 }
 0x354   :  { %v1623_v14 = vadd.f32 %v1779_v60, %v1777_v16  ;;  %1540 = vrot.lane.b32.xlu1 %v1492_v5, %s1920_s21  ;;  %v1781_v52 = vpop.eup %1780 }
 0x356   :  { %v1625_v37 = vadd.f32 %v1781_v52, %v1623_v14 }
 0x358   :  { %1782 = vrcp.f32 %v1625_v37 }
 0x359   :  { %v1493_v44 = vpop.f32.mrf.mxu2  ;;  %v1507_v26 = vpop.f32.mrf.mxu3 }
 0x35a   :  { %v1494_v10 = vadd.f32 %v1493_v44, %v3277_v25  ;;  %v1508_v11 = vadd.f32 %v1507_v26, %v3277_v25 }
 0x35c   :  { %1542 = vrot.lane.b32.xlu2 %v1494_v10, %s1920_s21  ;;  %1631 = vrot.lane.b32.xlu1 %v1506_v21, %s1920_s21 }
 0x35e   :  { %v1783_v43 = vpop.eup %1782 }
 0x35f   :  { %v1641_v47 = vmul.f32 %v1783_v43, %v1777_v16  ;;  %v3302_v53 = vmul.f32 %v1783_v43, %v1779_v60  ;;  %v3304_v12 = vmul.f32 %v1783_v43, %v1781_v52 }
 0x364   :  { %1633 = vrot.lane.b32.xlu2 %v1508_v11, %s1920_s21  ;;  %1384 = vperm.xlu1 %1767, %v3238_v62  }
 0x3b6   :  { %v1543_v62 = vpop.permute.xlu2 %1542 }
 0x3b7   :  { %v1550_v1 = vsel %vm1546_vm1, %v1543_v62, %v3277_v25  ;;  %v3320_v36 = vsel %vm1546_vm1, %v3277_v25, %v1543_v62 }
 0x3be   :  { %v1634_v40 = vpop.permute.xlu2 %1633 }
 0x3bf   :  { %v1640_v24 = vsel %vm1546_vm1, %v1634_v40, %v3277_v25  ;;  %v3324_v59 = vsel %vm1546_vm1, %v3277_v25, %v1634_v40 }
 0x3c6   :  { %v1541_v8 = vpop.permute.xlu1 %1540 }
 0x3c7   :  { %v1549_v35 = vsel %vm1546_vm1, %v1541_v8, %v94_v38  ;;  %v1547_v49 = vsel %vm1546_vm1, %v94_v38, %v1541_v8 }
 0x3c8   :  { %1584 = vrot.lane.b32.xlu0 %v1549_v35, %s1929_s0  ;;  %1565 = vrot.lane.b32.xlu1 %v1549_v35, %s1930_s2  ;;  %v3308_v33 = vmul.f32 %v1551_v63, %v1547_v49 }
 0x3c9   :  { %1563 = vrot.lane.b32.xlu2 %v1547_v49, %s1930_s2 }
 0x3ce   :  { %v1632_v4 = vpop.permute.xlu1 %1631 }
 0x3cf   :  { %v1639_v19 = vsel %vm1546_vm1, %v1632_v4, %v94_v38  ;;  %v1637_v20 = vsel %vm1546_vm1, %v94_v38, %v1632_v4 }
 0x3d0   :  { %1671 = vrot.lane.b32.xlu0 %v1637_v20, %s1929_s0  ;;  %v3312_v27 = vmul.f32 %v1641_v47, %v1637_v20  ;;  %1653 = vrot.lane.b32.xlu1 %v1637_v20, %s1930_s2 }
 0x3d1   :  { %1655 = vrot.lane.b32.xlu2 %v1639_v19, %s1930_s2 }
 0x3d6   :  { %v1385_v30 = vpop.permute.xlu1 %1384 }
 0x3d7   :  { %v1399_v57 = vadd.f32 %v3279_v6, %v1385_v30  ;;  %v1413_v34 = vadd.f32 %v3281_v17, %v1385_v30  ;;  %v1427_v25 = vadd.f32 %v3285_v23, %v1385_v30  ;;  %v1441_v55 = vadd.f32 %v3283_v3, %v1385_v30 }
 0x3d8   :  { %1569 = vrot.lane.b32.xlu0 %v1550_v1, %s1930_s2  ;;  %1659 = vrot.lane.b32.xlu1 %v1640_v24, %s1930_s2  ;;  %v1455_v18 = vadd.f32 %v3287_v48, %v1385_v30  ;;  %v1469_v45 = vadd.f32 %v3289_v9, %v1385_v30 }
 0x3d9   :  { %1582 = vrot.lane.b32.xlu2 %v1547_v49, %s1929_s0  ;;  %v1511_v42 = vmax.f32 %v1399_v57, %v1413_v34 }
 0x3da   :  { %v1602_v50 = vmax.f32 %v1441_v55, %v1455_v18 }
 0x3db   :  { %v1513_v15 = vmax.f32 %v1511_v42, %v1427_v25 }
 0x3dc   :  { %v1604_v31 = vmax.f32 %v1602_v50, %v1469_v45 }
 0x3dd   :  { %v1521_v39 = vsub.f32 %v1413_v34, %v1513_v15  ;;  %v1515_v46 = vsub.f32 %v1399_v57, %v1513_v15  ;;  %v1527_v0 = vsub.f32 %v1427_v25, %v1513_v15 }
 0x3de   :  { %v1612_v17 = vsub.f32 %v1455_v18, %v1604_v31  ;;  %v1606_v22 = vsub.f32 %v1441_v55, %v1604_v31  ;;  %v1618_v32 = vsub.f32 %v1469_v45, %v1604_v31 }
 0x3df   :  { %v1524_v7 = vmul.f32 1.442695, %v1521_v39  ;;  %v1518_v6 = vmul.f32 1.442695, %v1515_v46  ;;  %v1530_v23 = vmul.f32 1.442695, %v1527_v0 }
 0x3e0   :  { %1657 = vrot.lane.b32.xlu0 %v3324_v59, %s1930_s2  ;;  %1586 = vrot.lane.b32.xlu1 %v3320_v36, %s1929_s0  ;;  %v1615_v51 = vmul.f32 1.442695, %v1612_v17  ;;  %v1609_v3 = vmul.f32 1.442695, %v1606_v22  ;;  %v1621_v5 = vmul.f32 1.442695, %v1618_v32 }
 0x3e1   :  { %1567 = vrot.lane.b32.xlu2 %v3320_v36, %s1930_s2  ;;  %1784 = vpow2.f32 %v1524_v7 }
 0x3e2   :  { %1786 = vpow2.f32 %v1518_v6 }
 0x3e3   :  { %1788 = vpow2.f32 %v1530_v23 }
 0x3e4   :  { %1790 = vpow2.f32 %v1615_v51 }
 0x3e5   :  { %1792 = vpow2.f32 %v1609_v3 }
 0x3e6   :  { %1794 = vpow2.f32 %v1621_v5 }
 0x3e7   :  { %v1785_v48 = vpop.eup %1784 }
 0x3e8   :  { %1677 = vrot.lane.b32.xlu0 %v1640_v24, %s1929_s0  ;;  %1673 = vrot.lane.b32.xlu1 %v1639_v19, %s1929_s0  ;;  %v1787_v13 = vpop.eup %1786 }
 0x3e9   :  { %1588 = vrot.lane.b32.xlu2 %v1550_v1, %s1929_s0  ;;  %v1533_v16 = vadd.f32 %v1787_v13, %v1785_v48  ;;  %v1789_v52 = vpop.eup %1788 }
 0x3ea   :  { %v1791_v37 = vpop.eup %1790 }
 0x3eb   :  { %v1535_v44 = vadd.f32 %v1789_v52, %v1533_v16  ;;  %v1793_v21 = vpop.eup %1792 }
 0x3ec   :  { %v1795_v8 = vpop.eup %1794 }
 0x3ed   :  { %1796 = vrcp.f32 %v1535_v44 }
 0x3f1   :  { %1675 = vrot.lane.b32.xlu2 %v3324_v59, %s1929_s0 }
 0x3f3   :  { %v1797_v62 = vpop.eup %1796 }
 0x3f4   :  { %v1552_v19 = vmul.f32 %v1797_v62, %v1787_v13  ;;  %v1558_v20 = vmul.f32 %v1797_v62, %v1785_v48  ;;  %v1581_v30 = vmul.f32 %v1797_v62, %v1789_v52 }
 0x3f6   :  { %v1554_v24 = vmul.f32 %v1552_v19, %v3320_v36 }
 0x423   :  { %v1564_v61 = vpop.permute.xlu2 %1563 }
 0x42b   :  { %v1656_v41 = vpop.permute.xlu2 %1655 }
 0x433   :  { %v1583_v28 = vpop.permute.xlu2 %1582 }
 0x43a   :  { %v1585_v9 = vpop.permute.xlu0 %1584  ;;  %v1566_v29 = vpop.permute.xlu1 %1565 }
 0x43b   :  { %v1591_v38 = vsel %vm1590_vm2, %v1583_v28, %v1585_v9  ;;  %v1572_v63 = vsel %vm1571_vm3, %v1564_v61, %v1566_v29  ;;  %v1568_v47 = vpop.permute.xlu2 %1567 }
 0x43c   :  { %v1576_v58 = vmul.f32 %v1572_v63, %v3294_v54  ;;  %v1595_v60 = vmul.f32 %v1591_v38, %v3292_v2  ;;  %v1624_v54 = vadd.f32 %v1793_v21, %v1791_v37 }
 0x43e   :  { %v1578_v14 = vadd.f32 %v1576_v58, %v3308_v33  ;;  %v1626_v35 = vadd.f32 %v1795_v8, %v1624_v54 }
 0x440   :  { %v1597_v56 = vadd.f32 %v1595_v60, %v1578_v14  ;;  %1798 = vrcp.f32 %v1626_v35 }
 0x442   :  { %1599 = vst [vmem:[#allocation8] sm:$0xff] %v1597_v56  ;;  %v1672_v10 = vpop.permute.xlu0 %1671  ;;  %v1654_v26 = vpop.permute.xlu1 %1653 }
 0x443   :  { %v1661_v11 = vsel %vm1571_vm3, %v1654_v26, %v1656_v41  ;;  %v1589_v40 = vpop.permute.xlu2 %1588 }
 0x444   :  { %v1665_v43 = vmul.f32 %v1661_v11, %v3302_v53 }
 0x446   :  { %v1667_v2 = vadd.f32 %v1665_v43, %v3312_v27  ;;  %v1799_v34 = vpop.eup %1798 }
 0x447   :  { %v1642_v55 = vmul.f32 %v1799_v34, %v1793_v21  ;;  %v1648_v18 = vmul.f32 %v1799_v34, %v1791_v37  ;;  %v1670_v36 = vmul.f32 %v1799_v34, %v1795_v8 }
 0x449   :  { %v1644_v46 = vmul.f32 %v1642_v55, %v3324_v59 }
 0x44a   :  { %v1570_v49 = vpop.permute.xlu0 %1569  ;;  %v1660_v33 = vpop.permute.xlu1 %1659 }
 0x44b   :  { %v1573_v4 = vsel %vm1571_vm3, %v1568_v47, %v1570_v49  ;;  %v1676_v50 = vpop.permute.xlu2 %1675 }
 0x44c   :  { %v1577_v1 = vmul.f32 %v1573_v4, %v1558_v20 }
 0x44e   :  { %v1579_v42 = vadd.f32 %v1577_v1, %v1554_v24 }
 0x452   :  { %v1658_v53 = vpop.permute.xlu0 %1657  ;;  %v1587_v57 = vpop.permute.xlu1 %1586 }
 0x453   :  { %v1592_v27 = vsel %vm1590_vm2, %v1587_v57, %v1589_v40  ;;  %v1662_v61 = vsel %vm1571_vm3, %v1658_v53, %v1660_v33 }
 0x454   :  { %v1596_v25 = vmul.f32 %v1592_v27, %v1581_v30  ;;  %v1666_v39 = vmul.f32 %v1662_v61, %v1648_v18 }
 0x456   :  { %v1598_v15 = vadd.f32 %v1596_v25, %v1579_v42  ;;  %v1668_v6 = vadd.f32 %v1666_v39, %v1644_v46 }
 0x458   :  { %1600 = vst [vmem:[#allocation8 + $0x8] sm:$0xff] %v1598_v15 }
 0x45a   :  { %v1678_v45 = vpop.permute.xlu0 %1677  ;;  %v1674_v7 = vpop.permute.xlu1 %1673 }
 0x45b   :  { %v1680_v31 = vsel %vm1590_vm2, %v1676_v50, %v1678_v45  ;;  %v1679_v41 = vsel %vm1590_vm2, %v1672_v10, %v1674_v7 }
 0x45c   :  { %v1684_v0 = vmul.f32 %v1680_v31, %v1670_v36  ;;  %v1683_v17 = vmul.f32 %v1679_v41, %v3304_v12 }
 0x45e   :  { %v1686_v22 = vadd.f32 %v1684_v0, %v1668_v6  ;;  %v1685_v23 = vadd.f32 %v1683_v17, %v1667_v2 }
 0x460   :  { %1689 = vst [vmem:[#allocation8 + $0x18] sm:$0xff] %v1686_v22 }
 0x461   :  { %1688 = vst [vmem:[#allocation8 + $0x10] sm:$0xff] %v1685_v23 }
 0x462   :  { %1702 = dma.vmem_to_hbm [thread:$0]  %s1695_s29, 512, %s1697_s5, [#allocation4], %s1919_s20, %s1919_s20, %s1920_s21  }
 0x463   :  { %1916 = dma.done.wait [#allocation4], 512  }
 0x464   :  { %1917 = vsyncadd [#allocation4], 4294966784 }
 0x465   :  { %1707 = vsyncpa [#allocation3], 1 }
 0x466   :  { %1708 = vsyncpa [#allocation6], 1 }
 0x467   :  { %1709 = vsyncpa [#allocation4], 1 }

</bundles_post_ra>
